<compile_context>
chip_gen: v6e
topology: v6e:2x2x1
jax: 0.10.0
libtpu: 0.0.40
codegen_flags: <defaults>
</compile_context>

<pallas_src>
import functools
import math

import jax
import jax.numpy as jnp
from jax.experimental import pallas as pl
from jax.experimental.pallas import tpu as pltpu


# ----------------------------- Pallas kernels -----------------------------

def _conv_kernel(x_ref, w_ref, b_ref, o_ref, *stat_refs, k, p, th, wo, relu):
    """Fused KxK 'same' conv (stride 1) + bias (+ReLU) on one row-tile.

    x_ref: (1, Hp, Wp, Cin)  full padded image of this batch element (bf16)
    w_ref: (k*k*Cin, Cout)   weight, taps flattened onto the K axis (bf16)
    b_ref: (1, Cout)         bias (f32)
    o_ref: (1, th, wo, Cout) output row-tile
    stat_refs (only when BN follows): per-tile sum / sum-of-squares,
    each (1, 1, 1, Cout) f32.
    """
    r = pl.program_id(1)
    row0 = r * th
    if th % 8 == 0:
        # Sublane-aligned dynamic slice start -> unmasked vector loads.
        row0 = pl.multiple_of(row0, 8)
    thp = th + 2 * p
    # Slice the rows this tile needs (slices a VMEM-resident block, no HBM).
    xwin = x_ref[pl.ds(0, 1), pl.ds(row0, thp), :, :][0]      # (thp, Wp, Cin)
    cin = xwin.shape[-1]

    # In-VMEM im2col: k*k shifted views concatenated on the contraction axis,
    # ordered (dy, dx, cin) to match the (k,k,Cin,Cout)->2D weight reshape.
    taps = []
    for dy in range(k):
        for dx in range(k):
            taps.append(xwin[dy:dy + th, dx:dx + wo, :].reshape(th * wo, cin))
    xcol = taps[0] if len(taps) == 1 else jnp.concatenate(taps, axis=-1)

    # One deep MXU contraction, f32 accumulation.
    acc = jnp.dot(xcol, w_ref[...], preferred_element_type=jnp.float32)
    acc = acc + b_ref[...]                                     # bias (f32)
    if relu:
        acc = jnp.maximum(acc, 0.0)

    cout = acc.shape[-1]
    o_ref[...] = acc.reshape(1, th, wo, cout).astype(o_ref.dtype)

    if stat_refs:                       # partial BN statistics (training mode)
        s_ref, q_ref = stat_refs
        s_ref[...] = jnp.sum(acc, axis=0).reshape(1, 1, 1, cout)
        q_ref[...] = jnp.sum(acc * acc, axis=0).reshape(1, 1, 1, cout)


def _affine_kernel(y_ref, s_ref, t_ref, o_ref, *, relu):
    """Pre-folded BatchNorm apply: y * scale + shift (+ReLU).  One FMA/elem."""
    out = y_ref[...].astype(jnp.float32) * s_ref[...] + t_ref[...]
    if relu:
        out = jnp.maximum(out, 0.0)
    o_ref[...] = out.astype(o_ref.dtype)


# ----------------------------- wrappers -----------------------------

def _row_tile(H, W, target_rows):
    """Largest divisor of H whose tile spans <= target_rows output pixels."""
    th = max(1, min(H, max(1, target_rows // max(W, 1))))
    while H % th:
        th -= 1
    return th


def conv_forward(params, x_nchw, *, target_rows=1024):
    """Forward pass of the PyTorch `Conv` module. Input/output are NCHW f32."""
    k = params['k']
    p = (k - 1) // 2
    relu = params['relu']
    bn = params['bn']

    x = jnp.transpose(x_nchw, (0, 2, 3, 1))                    # NHWC
    N, H, W, Cin = x.shape
    Cout = params['b'].shape[0]

    # Zero-FLOP spatial padding + bf16 cast stay in plain-JAX glue.
    xp = jnp.pad(x, ((0, 0), (p, p), (p, p), (0, 0))) if p else x
    xp = xp.astype(jnp.bfloat16)
    Hp, Wp = H + 2 * p, W + 2 * p

    th = _row_tile(H, W, target_rows)
    n_rt = H // th
    grid = (N, n_rt)
    cparams = pltpu.CompilerParams(
        dimension_semantics=("parallel", "parallel"))

    in_specs = [
        pl.BlockSpec((1, Hp, Wp, Cin), lambda b, r: (b, 0, 0, 0)),
        pl.BlockSpec((k * k * Cin, Cout), lambda b, r: (0, 0)),
        pl.BlockSpec((1, Cout), lambda b, r: (0, 0)),
    ]
    y_spec = pl.BlockSpec((1, th, W, Cout), lambda b, r: (b, r, 0, 0))
    vec_spec = pl.BlockSpec((1, 1, 1, Cout), lambda b, r: (0, 0, 0, 0))
    bias = params['b'].reshape(1, Cout)

    if bn is None:
        y = pl.pallas_call(
            functools.partial(_conv_kernel, k=k, p=p, th=th, wo=W, relu=relu),
            grid=grid, in_specs=in_specs, out_specs=y_spec,
            out_shape=jax.ShapeDtypeStruct((N, H, W, Cout), jnp.float32),
            compiler_params=cparams,
        )(xp, params['w2d'], bias)
    else:
        stat_spec = pl.BlockSpec((1, 1, 1, Cout), lambda b, r: (b, r, 0, 0))
        y, psum, psq = pl.pallas_call(
            functools.partial(_conv_kernel, k=k, p=p, th=th, wo=W, relu=False),
            grid=grid, in_specs=in_specs,
            out_specs=(y_spec, stat_spec, stat_spec),
            out_shape=(jax.ShapeDtypeStruct((N, H, W, Cout), jnp.float32),
                       jax.ShapeDtypeStruct((N, n_rt, 1, Cout), jnp.float32),
                       jax.ShapeDtypeStruct((N, n_rt, 1, Cout), jnp.float32)),
            compiler_params=cparams,
        )(xp, params['w2d'], bias)

        # O(C) cross-tile reduction + scale/shift folding: negligible scalar
        # work, left to XLA.  Training-mode BN: biased variance, eps=1e-5.
        m = float(N * H * W)
        mean = jnp.sum(psum, axis=(0, 1, 2)) / m
        var = jnp.sum(psq, axis=(0, 1, 2)) / m - mean * mean
        var = jnp.maximum(var, 0.0)                     # guard fp cancellation
        scale = params['bn']['gamma'] * jax.lax.rsqrt(var + 1e-5)
        shift = params['bn']['beta'] - mean * scale

        y = pl.pallas_call(
            functools.partial(_affine_kernel, relu=relu),
            grid=grid,
            in_specs=[y_spec, vec_spec, vec_spec],
            out_specs=y_spec,
            out_shape=jax.ShapeDtypeStruct((N, H, W, Cout), jnp.float32),
            compiler_params=cparams,
        )(y, scale.reshape(1, 1, 1, Cout), shift.reshape(1, 1, 1, Cout))

    return jnp.transpose(y, (0, 3, 1, 2))                      # back to NCHW


# ----------------------------- parameter init -----------------------------

def init_conv(key, inp_dim, out_dim, kernel_size=3, bn=False, relu=True):
    k = kernel_size
    kw, kb, kg, kbt = jax.random.split(key, 4)
    fan_in = inp_dim * k * k
    bound = 1.0 / math.sqrt(fan_in)            # matches nn.Conv2d default init
    w_oihw = jax.random.uniform(kw, (out_dim, inp_dim, k, k),
                                jnp.float32, -bound, bound)
    b = jax.random.uniform(kb, (out_dim,), jnp.float32, -bound, bound)
    w_hwio = jnp.transpose(w_oihw, (2, 3, 1, 0))               # (k,k,Cin,Cout)
    w2d = w_hwio.reshape(k * k * inp_dim, out_dim).astype(jnp.bfloat16)
    params = {'k': k, 'relu': relu, 'w2d': w2d, 'w_hwio': w_hwio,
              'b': b, 'bn': None}
    if bn:
        params['bn'] = {
            'gamma': jax.random.uniform(kg, (out_dim,), jnp.float32, 0.5, 1.5),
            'beta': jax.random.uniform(kbt, (out_dim,), jnp.float32, -0.5, 0.5)}
    return params


# ----------------------------- reference -----------------------------

def conv_reference(params, x_nchw):
    k = params['k']
    p = (k - 1) // 2
    x = jnp.transpose(x_nchw, (0, 2, 3, 1))
    y = jax.lax.conv_general_dilated(
        x.astype(jnp.bfloat16), params['w_hwio'].astype(jnp.bfloat16),
        window_strides=(1, 1), padding=[(p, p), (p, p)],
        dimension_numbers=('NHWC', 'HWIO', 'NHWC'),
        preferred_element_type=jnp.float32)
    y = y + params['b']
    if params['bn'] is not None:
        mean = jnp.mean(y, axis=(0, 1, 2))
        var = jnp.mean(jnp.square(y - mean), axis=(0, 1, 2))
        y = (y - mean) * jax.lax.rsqrt(var + 1e-5) * params['bn']['gamma'] \
            + params['bn']['beta']
    if params['relu']:
        y = jnp.maximum(y, 0.0)
    return jnp.transpose(y, (0, 3, 1, 2))


# ----------------------------- main -----------------------------

if __name__ == "__main__":
    root = jax.random.PRNGKey(0)
    k_in, k1, k2, k3 = jax.random.split(root, 4)

    N, C, H, W = 2, 8, 16, 16
    x = jax.random.normal(k_in, (N, C, H, W), jnp.float32)

    configs = [
        # (init kwargs, target_rows)  -- first config exercises 2 row-tiles.
        (dict(out_dim=32, kernel_size=3, bn=True, relu=True), 128),
        (dict(out_dim=64, kernel_size=3, bn=False, relu=True), 1024),
        (dict(out_dim=16, kernel_size=1, bn=False, relu=False), 1024),
    ]
    for (cfg, tr), kk in zip(configs, (k1, k2, k3)):
        params = init_conv(kk, C, **cfg)
        fwd = jax.jit(functools.partial(conv_forward, params, target_rows=tr))
        out = jax.block_until_ready(fwd(x))
        ref = conv_reference(params, x)
        assert out.shape == ref.shape, (out.shape, ref.shape)
        assert bool(jnp.all(jnp.isfinite(out)))
        assert bool(jnp.all(jnp.abs(out - ref) <= 2e-2 + 2e-2 * jnp.abs(ref))), \
            float(jnp.max(jnp.abs(out - ref)))

    print("KERNEL_OK")
</pallas_src>

<mosaic_0001>
module attributes {stable_mosaic.version = 11 : i64} {
  func.func @_conv_kernel(%arg0: i32, %arg1: i32, %arg2: memref<1x18x18x8xbf16, #tpu.memory_space<vmem>>, %arg3: memref<72x32xbf16, #tpu.memory_space<vmem>>, %arg4: memref<1x32xf32, #tpu.memory_space<vmem>>, %arg5: memref<1x8x16x32xf32, #tpu.memory_space<vmem>>, %arg6: memref<1x1x1x32xf32, #tpu.memory_space<vmem>>, %arg7: memref<1x1x1x32xf32, #tpu.memory_space<vmem>>) attributes {dimension_semantics = [#tpu.dimension_semantics<parallel>, #tpu.dimension_semantics<parallel>], iteration_bounds = array<i64: 2, 2>, scalar_prefetch = 0 : i64, scratch_operands = 0 : i64, tpu.core_type = #tpu.core_type<tc>, window_params = [{transform_indices = @transform_0, window_bounds = array<i64: 1, 18, 18, 8>}, {pipeline_mode = #tpu.pipeline_mode<synchronous>, transform_indices = @transform_1, window_bounds = array<i64: 72, 32>}, {pipeline_mode = #tpu.pipeline_mode<synchronous>, transform_indices = @transform_2, window_bounds = array<i64: 1, 32>}, {transform_indices = @transform_3, window_bounds = array<i64: 1, 8, 16, 32>}, {transform_indices = @transform_4, window_bounds = array<i64: 1, 1, 1, 32>}, {transform_indices = @transform_5, window_bounds = array<i64: 1, 1, 1, 32>}]} {
    %c8_i32 = arith.constant 8 : i32
    %0 = arith.muli %arg1, %c8_i32 : i32
    %1 = tpu.assume_multiple %0, 8 : i32
    %c0 = arith.constant 0 : index
    %2 = arith.index_cast %1 : i32 to index
    %c0_0 = arith.constant 0 : index
    %c0_1 = arith.constant 0 : index
    %3 = vector.load %arg2[%c0, %2, %c0_0, %c0_1] : memref<1x18x18x8xbf16, #tpu.memory_space<vmem>>, vector<1x10x18x8xbf16>
    %4 = vector.shape_cast %3 : vector<1x10x18x8xbf16> to vector<10x18x8xbf16>
    %5 = vector.extract_strided_slice %4 {offsets = [0, 0, 0], sizes = [8, 16, 8], strides = [1, 1, 1]} : vector<10x18x8xbf16> to vector<8x16x8xbf16>
    %6 = vector.shape_cast %5 : vector<8x16x8xbf16> to vector<128x8xbf16>
    %7 = vector.extract_strided_slice %4 {offsets = [0, 1, 0], sizes = [8, 16, 8], strides = [1, 1, 1]} : vector<10x18x8xbf16> to vector<8x16x8xbf16>
    %8 = vector.shape_cast %7 : vector<8x16x8xbf16> to vector<128x8xbf16>
    %9 = vector.extract_strided_slice %4 {offsets = [0, 2, 0], sizes = [8, 16, 8], strides = [1, 1, 1]} : vector<10x18x8xbf16> to vector<8x16x8xbf16>
    %10 = vector.shape_cast %9 : vector<8x16x8xbf16> to vector<128x8xbf16>
    %11 = vector.extract_strided_slice %4 {offsets = [1, 0, 0], sizes = [8, 16, 8], strides = [1, 1, 1]} : vector<10x18x8xbf16> to vector<8x16x8xbf16>
    %12 = vector.shape_cast %11 : vector<8x16x8xbf16> to vector<128x8xbf16>
    %13 = vector.extract_strided_slice %4 {offsets = [1, 1, 0], sizes = [8, 16, 8], strides = [1, 1, 1]} : vector<10x18x8xbf16> to vector<8x16x8xbf16>
    %14 = vector.shape_cast %13 : vector<8x16x8xbf16> to vector<128x8xbf16>
    %15 = vector.extract_strided_slice %4 {offsets = [1, 2, 0], sizes = [8, 16, 8], strides = [1, 1, 1]} : vector<10x18x8xbf16> to vector<8x16x8xbf16>
    %16 = vector.shape_cast %15 : vector<8x16x8xbf16> to vector<128x8xbf16>
    %17 = vector.extract_strided_slice %4 {offsets = [2, 0, 0], sizes = [8, 16, 8], strides = [1, 1, 1]} : vector<10x18x8xbf16> to vector<8x16x8xbf16>
    %18 = vector.shape_cast %17 : vector<8x16x8xbf16> to vector<128x8xbf16>
    %19 = vector.extract_strided_slice %4 {offsets = [2, 1, 0], sizes = [8, 16, 8], strides = [1, 1, 1]} : vector<10x18x8xbf16> to vector<8x16x8xbf16>
    %20 = vector.shape_cast %19 : vector<8x16x8xbf16> to vector<128x8xbf16>
    %21 = vector.extract_strided_slice %4 {offsets = [2, 2, 0], sizes = [8, 16, 8], strides = [1, 1, 1]} : vector<10x18x8xbf16> to vector<8x16x8xbf16>
    %22 = vector.shape_cast %21 : vector<8x16x8xbf16> to vector<128x8xbf16>
    %23 = tpu.concatenate %6, %8, %10, %12, %14, %16, %18, %20, %22 in 1 : vector<128x8xbf16>, vector<128x8xbf16>, vector<128x8xbf16>, vector<128x8xbf16>, vector<128x8xbf16>, vector<128x8xbf16>, vector<128x8xbf16>, vector<128x8xbf16>, vector<128x8xbf16> -> vector<128x72xbf16>
    %c0_2 = arith.constant 0 : index
    %c0_3 = arith.constant 0 : index
    %24 = vector.load %arg3[%c0_2, %c0_3] : memref<72x32xbf16, #tpu.memory_space<vmem>>, vector<72x32xbf16>
    %cst = arith.constant dense<0.000000e+00> : vector<128x32xf32>
    %25 = tpu.matmul %23, %24, %cst {dimension_numbers = #tpu.dot_dimension_numbers<[1], [0], [0], [1], [0, 0, 1, 1], [], []>} : vector<128x72xbf16>, vector<72x32xbf16>, vector<128x32xf32> -> vector<128x32xf32>
    %c0_4 = arith.constant 0 : index
    %c0_5 = arith.constant 0 : index
    %26 = vector.load %arg4[%c0_4, %c0_5] : memref<1x32xf32, #tpu.memory_space<vmem>>, vector<1x32xf32>
    %27 = vector.broadcast %26 : vector<1x32xf32> to vector<128x32xf32>
    %28 = arith.addf %25, %27 : vector<128x32xf32>
    %29 = vector.shape_cast %28 : vector<128x32xf32> to vector<1x8x16x32xf32>
    %c0_6 = arith.constant 0 : index
    %c0_7 = arith.constant 0 : index
    %c0_8 = arith.constant 0 : index
    %c0_9 = arith.constant 0 : index
    %30 = vector.load %arg5[%c0_6, %c0_7, %c0_8, %c0_9] : memref<1x8x16x32xf32, #tpu.memory_space<vmem>>, vector<1x8x16x32xf32>
    tpu.vector_store %arg5[%c0_6, %c0_7, %c0_8, %c0_9], %29 {strides = array<i32>} : memref<1x8x16x32xf32, #tpu.memory_space<vmem>>, vector<1x8x16x32xf32>,
    %cst_10 = arith.constant dense<0.000000e+00> : vector<32xf32>
    %31 = vector.multi_reduction <add>, %28, %cst_10 [0] : vector<128x32xf32> to vector<32xf32>
    %32 = vector.shape_cast %31 : vector<32xf32> to vector<1x1x1x32xf32>
    %c0_11 = arith.constant 0 : index
    %c0_12 = arith.constant 0 : index
    %c0_13 = arith.constant 0 : index
    %c0_14 = arith.constant 0 : index
    %33 = vector.load %arg6[%c0_11, %c0_12, %c0_13, %c0_14] : memref<1x1x1x32xf32, #tpu.memory_space<vmem>>, vector<1x1x1x32xf32>
    tpu.vector_store %arg6[%c0_11, %c0_12, %c0_13, %c0_14], %32 {strides = array<i32>} : memref<1x1x1x32xf32, #tpu.memory_space<vmem>>, vector<1x1x1x32xf32>,
    %34 = arith.mulf %28, %28 : vector<128x32xf32>
    %cst_15 = arith.constant dense<0.000000e+00> : vector<32xf32>
    %35 = vector.multi_reduction <add>, %34, %cst_15 [0] : vector<128x32xf32> to vector<32xf32>
    %36 = vector.shape_cast %35 : vector<32xf32> to vector<1x1x1x32xf32>
    %c0_16 = arith.constant 0 : index
    %c0_17 = arith.constant 0 : index
    %c0_18 = arith.constant 0 : index
    %c0_19 = arith.constant 0 : index
    %37 = vector.load %arg7[%c0_16, %c0_17, %c0_18, %c0_19] : memref<1x1x1x32xf32, #tpu.memory_space<vmem>>, vector<1x1x1x32xf32>
    tpu.vector_store %arg7[%c0_16, %c0_17, %c0_18, %c0_19], %36 {strides = array<i32>} : memref<1x1x1x32xf32, #tpu.memory_space<vmem>>, vector<1x1x1x32xf32>,
    return
  }
  func.func @transform_0(%arg0: i32, %arg1: i32) -> (i32, i32, i32, i32) {
    %c0_i32 = arith.constant 0 : i32
    %c0_i32_0 = arith.constant 0 : i32
    %c0_i32_1 = arith.constant 0 : i32
    %c0_i32_2 = arith.constant 0 : i32
    return %arg0, %c0_i32, %c0_i32_0, %c0_i32_1 : i32, i32, i32, i32
  }
  func.func @transform_1(%arg0: i32, %arg1: i32) -> (i32, i32) {
    %c0_i32 = arith.constant 0 : i32
    %c0_i32_0 = arith.constant 0 : i32
    %c0_i32_1 = arith.constant 0 : i32
    return %c0_i32, %c0_i32_0 : i32, i32
  }
  func.func @transform_2(%arg0: i32, %arg1: i32) -> (i32, i32) {
    %c0_i32 = arith.constant 0 : i32
    %c0_i32_0 = arith.constant 0 : i32
    %c0_i32_1 = arith.constant 0 : i32
    return %c0_i32, %c0_i32_0 : i32, i32
  }
  func.func @transform_3(%arg0: i32, %arg1: i32) -> (i32, i32, i32, i32) {
    %c0_i32 = arith.constant 0 : i32
    %c0_i32_0 = arith.constant 0 : i32
    %c0_i32_1 = arith.constant 0 : i32
    return %arg0, %arg1, %c0_i32, %c0_i32_0 : i32, i32, i32, i32
  }
  func.func @transform_4(%arg0: i32, %arg1: i32) -> (i32, i32, i32, i32) {
    %c0_i32 = arith.constant 0 : i32
    %c0_i32_0 = arith.constant 0 : i32
    %c0_i32_1 = arith.constant 0 : i32
    return %arg0, %arg1, %c0_i32, %c0_i32_0 : i32, i32, i32, i32
  }
  func.func @transform_5(%arg0: i32, %arg1: i32) -> (i32, i32, i32, i32) {
    %c0_i32 = arith.constant 0 : i32
    %c0_i32_0 = arith.constant 0 : i32
    %c0_i32_1 = arith.constant 0 : i32
    return %arg0, %arg1, %c0_i32, %c0_i32_0 : i32, i32, i32, i32
  }
}

module attributes {stable_mosaic.version = 11 : i64} {
  func.func @_affine_kernel(%arg0: i32, %arg1: i32, %arg2: memref<1x8x16x32xf32, #tpu.memory_space<vmem>>, %arg3: memref<1x1x1x32xf32, #tpu.memory_space<vmem>>, %arg4: memref<1x1x1x32xf32, #tpu.memory_space<vmem>>, %arg5: memref<1x8x16x32xf32, #tpu.memory_space<vmem>>) attributes {dimension_semantics = [#tpu.dimension_semantics<parallel>, #tpu.dimension_semantics<parallel>], iteration_bounds = array<i64: 2, 2>, scalar_prefetch = 0 : i64, scratch_operands = 0 : i64, tpu.core_type = #tpu.core_type<tc>, window_params = [{transform_indices = @transform_0, window_bounds = array<i64: 1, 8, 16, 32>}, {pipeline_mode = #tpu.pipeline_mode<synchronous>, transform_indices = @transform_1, window_bounds = array<i64: 1, 1, 1, 32>}, {pipeline_mode = #tpu.pipeline_mode<synchronous>, transform_indices = @transform_2, window_bounds = array<i64: 1, 1, 1, 32>}, {transform_indices = @transform_3, window_bounds = array<i64: 1, 8, 16, 32>}]} {
    %c0 = arith.constant 0 : index
    %c0_0 = arith.constant 0 : index
    %c0_1 = arith.constant 0 : index
    %c0_2 = arith.constant 0 : index
    %0 = vector.load %arg2[%c0, %c0_0, %c0_1, %c0_2] : memref<1x8x16x32xf32, #tpu.memory_space<vmem>>, vector<1x8x16x32xf32>
    %c0_3 = arith.constant 0 : index
    %c0_4 = arith.constant 0 : index
    %c0_5 = arith.constant 0 : index
    %c0_6 = arith.constant 0 : index
    %1 = vector.load %arg3[%c0_3, %c0_4, %c0_5, %c0_6] : memref<1x1x1x32xf32, #tpu.memory_space<vmem>>, vector<1x1x1x32xf32>
    %2 = vector.broadcast %1 : vector<1x1x1x32xf32> to vector<1x8x16x32xf32>
    %3 = arith.mulf %0, %2 : vector<1x8x16x32xf32>
    %c0_7 = arith.constant 0 : index
    %c0_8 = arith.constant 0 : index
    %c0_9 = arith.constant 0 : index
    %c0_10 = arith.constant 0 : index
    %4 = vector.load %arg4[%c0_7, %c0_8, %c0_9, %c0_10] : memref<1x1x1x32xf32, #tpu.memory_space<vmem>>, vector<1x1x1x32xf32>
    %5 = vector.broadcast %4 : vector<1x1x1x32xf32> to vector<1x8x16x32xf32>
    %6 = arith.addf %3, %5 : vector<1x8x16x32xf32>
    %cst = arith.constant 0.000000e+00 : f32
    %7 = vector.broadcast %cst : f32 to vector<1x8x16x32xf32>
    %8 = arith.maximumf %6, %7 : vector<1x8x16x32xf32>
    %c0_11 = arith.constant 0 : index
    %c0_12 = arith.constant 0 : index
    %c0_13 = arith.constant 0 : index
    %c0_14 = arith.constant 0 : index
    %9 = vector.load %arg5[%c0_11, %c0_12, %c0_13, %c0_14] : memref<1x8x16x32xf32, #tpu.memory_space<vmem>>, vector<1x8x16x32xf32>
    tpu.vector_store %arg5[%c0_11, %c0_12, %c0_13, %c0_14], %8 {strides = array<i32>} : memref<1x8x16x32xf32, #tpu.memory_space<vmem>>, vector<1x8x16x32xf32>,
    return
  }
  func.func @transform_0(%arg0: i32, %arg1: i32) -> (i32, i32, i32, i32) {
    %c0_i32 = arith.constant 0 : i32
    %c0_i32_0 = arith.constant 0 : i32
    %c0_i32_1 = arith.constant 0 : i32
    return %arg0, %arg1, %c0_i32, %c0_i32_0 : i32, i32, i32, i32
  }
  func.func @transform_1(%arg0: i32, %arg1: i32) -> (i32, i32, i32, i32) {
    %c0_i32 = arith.constant 0 : i32
    %c0_i32_0 = arith.constant 0 : i32
    %c0_i32_1 = arith.constant 0 : i32
    %c0_i32_2 = arith.constant 0 : i32
    %c0_i32_3 = arith.constant 0 : i32
    return %c0_i32, %c0_i32_0, %c0_i32_1, %c0_i32_2 : i32, i32, i32, i32
  }
  func.func @transform_2(%arg0: i32, %arg1: i32) -> (i32, i32, i32, i32) {
    %c0_i32 = arith.constant 0 : i32
    %c0_i32_0 = arith.constant 0 : i32
    %c0_i32_1 = arith.constant 0 : i32
    %c0_i32_2 = arith.constant 0 : i32
    %c0_i32_3 = arith.constant 0 : i32
    return %c0_i32, %c0_i32_0, %c0_i32_1, %c0_i32_2 : i32, i32, i32, i32
  }
  func.func @transform_3(%arg0: i32, %arg1: i32) -> (i32, i32, i32, i32) {
    %c0_i32 = arith.constant 0 : i32
    %c0_i32_0 = arith.constant 0 : i32
    %c0_i32_1 = arith.constant 0 : i32
    return %arg0, %arg1, %c0_i32, %c0_i32_0 : i32, i32, i32, i32
  }
}

</mosaic_0001>

<bundles_post_ra>
// kernel: conv_forward.3
= control target key start
LH: loop header
LB: loop body
LE: loop exit
PB: predicated region body
PF: predicated region fallthrough
CT: control target
= control target key end

     0   :  { %8 = vsyncpa [#allocation3], 0  ;;  %s853_s0 = inlined_call_operand.vmem [shape: f32[2,16,16,32], index: 0, kind: input, shape index: {}]   ;;  %s854_s1 = inlined_call_operand.vmem [shape: f32[1,1,1,32], index: 1, kind: input, shape index: {}]   ;;  %s855_s2 = inlined_call_operand.vmem [shape: f32[1,1,1,32], index: 2, kind: input, shape index: {}]   ;;  %s856_s3 = inlined_call_operand.hbm [shape: f32[2,16,16,32], index: 3, kind: output, shape index: {}]  }
   0x1   :  { %10 = vsyncpa [#allocation3 + $0x1], 0  ;;  %s610_s12 = smov 0   ;;  %s612_s13 = smov 0  }
   0x2   :  { %s614_s14 = smov 0   ;;  %s616_s15 = smov 0  }
   0x3   :  { %s618_s16 = smov 0   ;;  %s620_s17 = smov 0  }
   0x4   :  { %s622_s18 = smov 0   ;;  %s624_s19 = smov 0  }
   0x5 LB: > { %s400_s20 = sadd.s32 4294967295, %s585_s19   ;;  %s401_s21 = sadd.s32 4294967294, %s585_s19   ;;  %s585_s19 = sphi %s624_s19, %s16_s19   ;;  %s581_s18 = sphi %s622_s18, %s865_s18   ;;  %s577_s17 = sphi %s620_s17, %s864_s17   ;;  %s573_s16 = sphi %s618_s16, %s863_s16   ;;  %s569_s15 = sphi %s616_s15, %s862_s15   ;;  %s565_s14 = sphi %s614_s14, %s861_s14   ;;  %s561_s13 = sphi %s612_s13, %s860_s13   ;;  %s557_s12 = sphi %s610_s12, %s859_s12  }
   0x6   : > { %s25_s22 = sadd.s32 1, %s577_s17  ;;  %s28_s23 = sadd.s32 1, %s581_s18 }
   0x7   : > { %p26_p0 = scmp.ge.s32.totalorder %s25_s22, 2  ;;  %p117_p1 = scmp.ne.s32.totalorder %s565_s14, %s561_s13 }
   0x8   : > { %p118_p2 = scmp.eq.s32.totalorder %s400_s20, 3  ;;  %p123_p5 = scmp.ne.s32.totalorder %s561_s13, %s557_s12 }
   0x9   : > { %s867_s22 = smov (%p26_p0, %s25_s22), 0  ;;  %s869_s23 = smov (!%p26_p0, %s28_s23), %s581_s18 }
   0xa   : > { %s103_s24 = ssub.s32 %s577_s17, %s867_s22  ;;  %p661_p3 = por %p118_p2, %p117_p1 }
   0xb   : > { %p30_p4 = scmp.ge.s32.totalorder %s869_s23, 2  ;;  %p124_p6 = scmp.eq.s32.totalorder %s401_s21, 3 }
   0xc   : > { %p404_p7 = scmp.ge.s32.totalorder %s585_s19, 1  ;;  %p162_p9 = scmp.lt.s32.totalorder %s585_s19, 5 }
   0xd   : > { %s871_s23 = smov (%p30_p4, %s869_s23), 0  ;;  %p670_p8 = por %p124_p6, %p123_p5 }
   0xe   : > { %s102_s27 = ssub.s32 %s581_s18, %s871_s23  ;;  %s107_s28 = sadd.s32 1, %s565_s14 }
   0xf   : > { %s104_s29 = sor.u32 %s103_s24, %s102_s27  ;;  %p163_p10 = pnand %p404_p7, %p162_p9 }
  0x10   : > { %p105_p11 = scmp.eq.s32.totalorder %s104_s29, 0  ;;  %s406_s4 = sshll.u32 (!%p163_p10), %s569_s15, 3 }
  0x11   : > { %166 = sbr.rel (%p163_p10) target bundleno = 59 (0x3b), region = 32  ;;  %p192_p12 = scmp.lt.s32.totalorder (!%p163_p10), %s573_s16, 1 }
  0x12   : > { %s679_s30 = scalar_select %p105_p11, %s565_s14, %s107_s28  }
  0x13   : > { %p194_p13 = scmp.lt.s32.totalorder (!%p163_p10), %s406_s4, 15  ;;  %s188_s8 = sand.u32 (!%p163_p10), 1, %s561_s13  }
  0x14   : > { %s802_s21 = scalar_lea.sflag (!%p163_p10), [#allocation3], %s188_s8 }
  0x16   : > { %s193_s5 = scalar_select %p192_p12, %s573_s16, 1  ;;  %v688_v0 = vld [vmem:[%s854_s1] ss:$0 sm:$0xff]  ;;  %vm281_vm0 = vcmask 261120  }
  0x17   : > { %s873_s4 = smov (!%p194_p13, %s406_s4), 15  ;;  %v698_v1 = vld [vmem:[%s855_s2] ss:$0 sm:$0xff] }
  0x18   : > { %s408_s6 = sshll.u32 %s193_s5, 5  ;;  %s407_s7 = sshll.u32 %s873_s4, 1 }
  0x19   : > { %s198_s9 = sadd.s32 %s408_s6, %s407_s7  ;;  %s702_s4 = sshll.u32 %s188_s8, 7 }
  0x1a   : > { %s409_s10 = sshll.u32 %s198_s9, 3  ;;  %s419_s5 = sshll.u32 %s569_s15, 4 }
  0x1b   : > { %s693_s27 = scalar_lea.vmem %s853_s0, %s409_s10  ;;  %s415_s6 = sshll.u32 %s573_s16, 5 }
  0x1c   : > { %v203_v2 = vld [vmem:[%s693_s27] sm:$0xff]  ;;  %v204_v3 = vld [vmem:[%s693_s27 + $0x8] sm:$0xff]  ;;  %v205_v4 = vld [vmem:[%s693_s27 + $0x10] sm:$0xff]  ;;  %s738_s7 = scalar_lea.vmem [#allocation2], %s702_s4  ;;  %s750_s15 = sadd.s32 %s419_s5, %s415_s6 }
  0x1d   : > { %v226_v5 = vmul.f32 %v688_v0, %v203_v2  ;;  %v227_v6 = vmul.f32 %v688_v0, %v204_v3  ;;  %v228_v7 = vmul.f32 %v688_v0, %v205_v4  ;;  %v206_v8 = vld [vmem:[%s693_s27 + $0x18] sm:$0xff]  ;;  %v207_v9 = vld [vmem:[%s693_s27 + $0x20] sm:$0xff]  ;;  %v208_v10 = vld [vmem:[%s693_s27 + $0x28] sm:$0xff]  ;;  %s416_s16 = sshll.u32 %s750_s15, 7  ;;  %s315_s9 = sshll.u32 %s738_s7, 4  ;;  %s788_s9 = int_to_ptr.vmem [resolvable:$true] %s315_s9 }
  0x1e   : > { %v229_v11 = vmul.f32 %v688_v0, %v206_v8  ;;  %v230_v12 = vmul.f32 %v688_v0, %v207_v9  ;;  %v231_v13 = vmul.f32 %v688_v0, %v208_v10  ;;  %v209_v14 = vld [vmem:[%s693_s27 + $0x30] sm:$0xff]  ;;  %v210_v15 = vld [vmem:[%s693_s27 + $0x38] sm:$0xff]  ;;  %v211_v24 = vld [vmem:[%s693_s27 + $0x40] sm:$0xff]  ;;  %s786_s20 = scalar_lea.hbm %s856_s3, %s416_s16  ;;  %s493_s24 = scalar_lea.vmem %s788_s9, 2048 }
  0x1f   : > { %v249_v16 = vadd.f32 %v698_v1, %v226_v5  ;;  %v250_v17 = vadd.f32 %v698_v1, %v227_v6  ;;  %v251_v18 = vadd.f32 %v698_v1, %v228_v7  ;;  %v232_v19 = vmul.f32 %v688_v0, %v209_v14  ;;  %v212_v25 = vld [vmem:[%s693_s27 + $0x48] sm:$0xff]  ;;  %v213_v26 = vld [vmem:[%s693_s27 + $0x50] sm:$0xff]  ;;  %v214_v31 = vld [vmem:[%s693_s27 + $0x58] sm:$0xff]  ;;  %p494_p0 = scmp.ne.s32.totalorder %s788_s9, %s493_s24 }
  0x20   : > { %v252_v20 = vadd.f32 %v698_v1, %v229_v11  ;;  %v253_v21 = vadd.f32 %v698_v1, %v230_v12  ;;  %v254_v22 = vadd.f32 %v698_v1, %v231_v13  ;;  %v233_v23 = vmul.f32 %v688_v0, %v210_v15  ;;  %v215_v32 = vld [vmem:[%s693_s27 + $0x60] sm:$0xff]  ;;  %v216_v33 = vld [vmem:[%s693_s27 + $0x68] sm:$0xff]  ;;  %v217_v38 = vld [vmem:[%s693_s27 + $0x70] sm:$0xff] }
  0x21   : > { %v265_v27 = vmax.f32 %v249_v16, 0.0  ;;  %v266_v28 = vmax.f32 %v250_v17, 0.0  ;;  %v267_v29 = vmax.f32 %v251_v18, 0.0  ;;  %v255_v30 = vadd.f32 %v698_v1, %v232_v19  ;;  %v218_v43 = vld [vmem:[%s693_s27 + $0x78] sm:$0xff]  ;;  %p495_p1 = pnand %p494_p0, %p661_p3  ;;  %s587_s27 = smov [#allocation2]  }
  0x22   : > { %v268_v34 = vmax.f32 %v252_v20, 0.0  ;;  %v269_v35 = vmax.f32 %v253_v21, 0.0  ;;  %v270_v36 = vmax.f32 %v254_v22, 0.0  ;;  %v256_v37 = vadd.f32 %v698_v1, %v233_v23  ;;  %s497_s28 = sshll.u32 %s587_s27, 4  ;;  %s498_s28 = int_to_ptr.vmem [resolvable:$false] %s497_s28 }
  0x23   : > { %282 = vst.msk [vmem:[%s738_s7] sm:$0xff] %vm281_vm0, %v265_v27  ;;  %283 = vst.msk [vmem:[%s738_s7 + $0x8] sm:$0xff] %vm281_vm0, %v266_v28  ;;  %v271_v39 = vmax.f32 %v255_v30, 0.0  ;;  %v234_v40 = vmul.f32 %v688_v0, %v211_v24  ;;  %v235_v41 = vmul.f32 %v688_v0, %v212_v25  ;;  %v236_v42 = vmul.f32 %v688_v0, %v213_v26  ;;  %p496_p2 = pneg %p495_p1  ;;  %s499_s29 = scalar_lea.vmem %s498_s28, 4096 }
  0x24   : > { %284 = vst.msk [vmem:[%s738_s7 + $0x10] sm:$0xff] %vm281_vm0, %v267_v29  ;;  %285 = vst.msk [vmem:[%s738_s7 + $0x18] sm:$0xff] %vm281_vm0, %v268_v34  ;;  %v272_v44 = vmax.f32 %v256_v37, 0.0  ;;  %v237_v45 = vmul.f32 %v688_v0, %v214_v31  ;;  %v238_v46 = vmul.f32 %v688_v0, %v215_v32  ;;  %v239_v47 = vmul.f32 %v688_v0, %v216_v33  ;;  %p500_p4 = scmp.lt.s32.totalorder %s788_s9, %s498_s28  ;;  %p501_p5 = scmp.lt.s32.totalorder %s499_s29, %s493_s24 }
  0x25   : > { %286 = vst.msk [vmem:[%s738_s7 + $0x20] sm:$0xff] %vm281_vm0, %v269_v35  ;;  %287 = vst.msk [vmem:[%s738_s7 + $0x28] sm:$0xff] %vm281_vm0, %v270_v36  ;;  %v257_v48 = vadd.f32 %v698_v1, %v234_v40  ;;  %v258_v49 = vadd.f32 %v698_v1, %v235_v41  ;;  %v259_v50 = vadd.f32 %v698_v1, %v236_v42 }
  0x26   : > { %288 = vst.msk [vmem:[%s738_s7 + $0x30] sm:$0xff] %vm281_vm0, %v271_v39  ;;  %v240_v51 = vmul.f32 %v688_v0, %v217_v38  ;;  %289 = vst.msk [vmem:[%s738_s7 + $0x38] sm:$0xff] %vm281_vm0, %v272_v44  ;;  %v260_v52 = vadd.f32 %v698_v1, %v237_v45  ;;  %v261_v53 = vadd.f32 %v698_v1, %v238_v46  ;;  %p502_p6 = por %p501_p5, %p500_p4 }
  0x27   : > { %v262_v54 = vadd.f32 %v698_v1, %v239_v47  ;;  %v241_v55 = vmul.f32 %v688_v0, %v218_v43  ;;  %v273_v56 = vmax.f32 %v257_v48, 0.0  ;;  %v274_v57 = vmax.f32 %v258_v49, 0.0 }
  0x28   : > { %v275_v58 = vmax.f32 %v259_v50, 0.0  ;;  %v263_v59 = vadd.f32 %v698_v1, %v240_v51  ;;  %v276_v60 = vmax.f32 %v260_v52, 0.0  ;;  %v277_v61 = vmax.f32 %v261_v53, 0.0  ;;  %p503_p7 = pnand %p502_p6, %p496_p2 }
  0x29   : > { %v278_v62 = vmax.f32 %v262_v54, 0.0  ;;  %v264_v63 = vadd.f32 %v698_v1, %v241_v55  ;;  %290 = vst.msk [vmem:[%s738_s7 + $0x40] sm:$0xff] %vm281_vm0, %v273_v56  ;;  %291 = vst.msk [vmem:[%s738_s7 + $0x48] sm:$0xff] %vm281_vm0, %v274_v57 }
  0x2a   : > { %292 = vst.msk [vmem:[%s738_s7 + $0x50] sm:$0xff] %vm281_vm0, %v275_v58  ;;  %v279_v0 = vmax.f32 %v263_v59, 0.0  ;;  %293 = vst.msk [vmem:[%s738_s7 + $0x58] sm:$0xff] %vm281_vm0, %v276_v60 }
  0x2b   : > { %294 = vst.msk [vmem:[%s738_s7 + $0x60] sm:$0xff] %vm281_vm0, %v277_v61  ;;  %295 = vst.msk [vmem:[%s738_s7 + $0x68] sm:$0xff] %vm281_vm0, %v278_v62  ;;  %v280_v1 = vmax.f32 %v264_v63, 0.0 }
  0x2c   : > { %296 = vst.msk [vmem:[%s738_s7 + $0x70] sm:$0xff] %vm281_vm0, %v279_v0 }
  0x2d   : > { %297 = vst.msk [vmem:[%s738_s7 + $0x78] sm:$0xff] %vm281_vm0, %v280_v1 }
  0x2e   : > { %506 = shalt.err (!%p503_p7)
}
  0x2f   : > { %s507_s8 = scalar_lea.hbm %s786_s20, 2048  ;;  %s511_s6 = scalar_lea.hbm %s856_s3, 8192 }
  0x30   : > { %p508_p9 = scmp.ne.s32.totalorder %s786_s20, %s507_s8  ;;  %p512_p12 = scmp.lt.s32.totalorder %s786_s20, %s856_s3 }
  0x31   : > { %p513_p13 = scmp.lt.s32.totalorder %s511_s6, %s507_s8 }
  0x32   : > { %p509_p10 = pnand %p508_p9, %p661_p3 }
  0x33   : > { %p514_p0 = por %p513_p13, %p512_p12 }
  0x34   : > { %p510_p11 = pneg %p509_p10 }
  0x36   : > { %p515_p1 = pnand %p514_p0, %p510_p11 }
  0x38   : > { %518 = shalt.err (!%p515_p1)
}
  0x39   : > { %s588_s16 = smov 128   ;;  %s589_s10 = smov 8  }
  0x3a   : > { %420 = dma.vmem_to_hbm [thread:$0]  (%p661_p3), %s788_s9, 2048, %s786_s20, %s802_s21, %s588_s16, %s588_s16, %s589_s10  }
  0x3b PF: > { %p426_p2 = scmp.ge.s32.totalorder %s585_s19, 2  ;;  %s330_s11 = sand.u32 1, %s557_s12  }
  0x3c   : > { %s331_s24 = scalar_lea.sflag [#allocation3], %s330_s11 }
  0x3d   : > { %p423_p4 = pnand %p426_p2, %p670_p8 }
  0x3f   : > { %p424_p5 = pneg %p423_p4 }
  0x41   : > { %552 = dma.done.wait (%p424_p5), %s331_s24, 2048  }
  0x42   : > { %554 = vsyncadd (%p424_p5), %s331_s24, 4294965248  ;;  %s16_s19 = sadd.s32 1, %s585_s19   ;;  %s859_s12 = smov %s561_s13 }
  0x43   : > { %p13_p6 = scmp.ge.s32.totalorder %s16_s19, 6   ;;  %s860_s13 = smov %s565_s14 }
  0x44   : > { %s861_s14 = smov %s679_s30  ;;  %s862_s15 = smov %s577_s17 }
  0x45   : > { %s863_s16 = smov %s581_s18  ;;  %s864_s17 = smov %s867_s22 }
  0x46   : > { %s865_s18 = smov %s871_s23  ;;  %15 = sbr.rel (!%p13_p6) target bundleno = 5 (0x5), region = 67 }
  0x4b   :  { %336 = vsyncpa [#allocation3], 1 }
  0x4c   :  { %338 = vsyncpa [#allocation3 + $0x1], 1 }

// kernel: conv_forward.2
= control target key start
LH: loop header
LB: loop body
LE: loop exit
PB: predicated region body
PF: predicated region fallthrough
CT: control target
= control target key end

     0   :  { %s1739_s18 = smov 0   ;;  %s1741_s19 = smov 0   ;;  %s2428_s0 = inlined_call_operand.vmem [shape: bf16[2,18,18,8], index: 0, kind: input, shape index: {}]   ;;  %s2429_s1 = inlined_call_operand.vmem [shape: bf16[72,32], index: 1, kind: input, shape index: {}]   ;;  %s2430_s2 = inlined_call_operand.vmem [shape: f32[1,32], index: 2, kind: input, shape index: {}]   ;;  %s2431_s3 = inlined_call_operand.vmem [shape: f32[2,16,16,32], index: 3, kind: output, shape index: {0}]   ;;  %s2432_s4 = inlined_call_operand.vmem [shape: f32[2,2,1,32], index: 4, kind: output, shape index: {1}]   ;;  %s2433_s5 = inlined_call_operand.vmem [shape: f32[2,2,1,32], index: 5, kind: output, shape index: {2}]  }
   0x1   :  { %s1743_s20 = smov 0   ;;  %s1745_s21 = smov 0  }
   0x2   :  { %s1747_s22 = smov 0  }
   0x3 LB: > { %s25_s23 = sadd.s32 1, %s1691_s20  ;;  %s28_s24 = sadd.s32 1, %s1695_s21  ;;  %s1699_s22 = sphi %s1747_s22, %s16_s22   ;;  %s1695_s21 = sphi %s1745_s21, %s2441_s21   ;;  %s1691_s20 = sphi %s1743_s20, %s2440_s20   ;;  %s1687_s19 = sphi %s1741_s19, %s2439_s19   ;;  %s1683_s18 = sphi %s1739_s18, %s2438_s18  }
   0x4   : > { %p26_p0 = scmp.ge.s32.totalorder %s25_s23, 2  ;;  %p1478_p1 = scmp.ge.s32.totalorder %s1699_s22, 1 }
   0x5   : > { %p210_p2 = scmp.lt.s32.totalorder %s1699_s22, 5 }
   0x6   : > { %s2443_s23 = smov (%p26_p0, %s25_s23), 0  ;;  %s2445_s24 = smov (!%p26_p0, %s28_s24), %s1695_s21 }
   0x7   : > { %p211_p3 = pnand %p1478_p1, %p210_p2  ;;  %p30_p4 = scmp.ge.s32.totalorder %s2445_s24, 2 }
   0x8   : > { %p257_p5 = scmp.lt.s32.totalorder (!%p211_p3), %s1687_s19, 1  ;;  %s1545_s25 = smul.u32 (!%p211_p3), 96, %s1683_s18 }
   0x9   : > { %s2447_s24 = smov (%p30_p4, %s2445_s24), 0  ;;  %214 = sbr.rel (%p211_p3) target bundleno = 490 (0x1ea), region = 32 }
   0xa   : > { %s1701_s6 = smov (!%p211_p3), 24   ;;  %s1702_s7 = smov (!%p211_p3), 48  }
   0xb   : > { %s1703_s8 = smov (!%p211_p3), 40   ;;  %s1704_s9 = smov (!%p211_p3), 16  }
   0xc   : > { %s1705_s10 = smov (!%p211_p3), 8   ;;  %s1706_s11 = smov (!%p211_p3), 32  }
   0xd   : > { %s1707_s12 = smov (!%p211_p3), 56   ;;  %s1708_s13 = smov (!%p211_p3), 64  }
   0xe   : > { %s2449_s19 = smov (!%p257_p5, %s1687_s19), 1  ;;  %vm541_vm0 = vcmask 1042432   ;;  %vm542_vm1 = vcmask 1046532   ;;  %vm322_vm2 = vsmask.f32 3328  ;;  %vm1090_vm6 = vcmask 1043456  }
   0xf   : > { %s1597_s26 = smul.u32 216, %s2449_s19  ;;  %vm323_vm3 = vsmask.f32 7440  ;;  %vm1824_vm4 = vmor %vm541_vm0, %vm542_vm1  ;;  %v1659_v58 = vld [vmem:[%s2429_s1 + $0x8] sm:$0xff]   ;;  %vm886_vm7 = vcmask 64512   ;;  %vm911_vm8 = vcmask 130048  }
  0x10   : > { %vm1860_vm5 = vmor %vm322_vm2, %vm323_vm3  ;;  %vm928_vm9 = vcmask 195584   ;;  %vm945_vm10 = vcmask 261120   ;;  %vm962_vm11 = vcmask 326656   ;;  %vm979_vm12 = vcmask 392192   ;;  %p275_p7 = scmp.lt.s32.totalorder %s1683_s18, 1  ;;  %s1484_s16 = sshll.u32 %s2449_s19, 1 }
  0x11   : > { %s261_s29 = scalar_lea.vmem %s2428_s0, %s1597_s26  ;;  %vm996_vm13 = vcmask 457728   ;;  %vm1013_vm14 = vcmask 523264   ;;  %vm1073_vm15 = vcmask 588800   ;;  %vm1244_vm0 = vcmask 253952  }
  0x12   : > { %s1778_s30 = scalar_lea.vmem %s261_s29, %s1545_s25 }
  0x13   : > { %v1781_v0 = vld [vmem:[%s1778_s30 + $0x18] sm:$0xf]  ;;  %v1784_v1 = vld [vmem:[%s1778_s30 + $0x1c] sm:$0xf]  ;;  %v295_v2 = vld [vmem:[%s1778_s30 + $0xc] sm:$0xf] }
  0x14   : > { %v387_v3 = vshrl.u32 %v1784_v1, 16  ;;  %v1790_v4 = vcombine.low %v1781_v0, %v1784_v1  ;;  %v374_v5 = vshrl.u32 %v1781_v0, 16  ;;  %v377_v6 = vshll.u32 %v1781_v0, 16  ;;  %v1795_v7 = vld [vmem:[%s1778_s30 + $0x10] sm:$0xf] }
  0x15   : > { %v359_v8 = vshll.u32 %v1795_v7, 16  ;;  %v363_v9 = vshrl.u32 %v1795_v7, 16  ;;  %v1800_v10 = vcombine.low %v295_v2, %v1795_v7  ;;  %v350_v11 = vshrl.u32 %v295_v2, 16  ;;  %v1803_v12 = vld [vmem:[%s1778_s30 + $0x24] sm:$0xf] }
  0x16   : > { %777 = vrot.lane.b32.xlu1 %v1790_v4, %s1701_s6  ;;  %v353_v13 = vshll.u32 %v295_v2, 16  ;;  %v1808_v14 = vld [vmem:[%s1778_s30 + $0x28] sm:$0xf]  ;;  %v398_v15 = vshrl.u32 %v1803_v12, 16  ;;  %v401_v16 = vshll.u32 %v1803_v12, 16  ;;  %v1490_v17 = vrot.slane %v295_v2, 9 }
  0x17   : > { %v1812_v18 = vrot.slane %v363_v9, 4  ;;  %775 = vrot.lane.b32.xlu0 %v1800_v10, %s1701_s6  ;;  %v352_v19 = vrot.slane %v350_v11, 4  ;;  %v411_v20 = vshrl.u32 %v1808_v14, 16  ;;  %v1819_v21 = vcombine.low %v1803_v12, %v1808_v14  ;;  %v297_v22 = vld [vmem:[%s1778_s30 + $0x14] sm:$0x1] }
  0x18   : > { %v355_v24 = vrot.slane %v353_v13, 5  ;;  %v553_v25 = vrot.slane %v1795_v7, 5  ;;  %v556_v26 = vrot.slane %v297_v22, 5  ;;  %v1830_v27 = vld [vmem:[%s1778_s30] sm:$0xf]  ;;  %v1491_v28 = vrot.slane %v1781_v0, 9 }
  0x19   : > { %v1834_v29 = vld [vmem:[%s1778_s30 + $0x4] sm:$0xf]  ;;  %v294_v30 = vld [vmem:[%s1778_s30 + $0x8] sm:$0x1]  ;;  %v1489_v31 = vrot.slane %v1830_v27, 9  ;;  %v326_v32 = vshrl.u32 %v1830_v27, 16 }
  0x1a   : > { %834 = vrot.lane.b32.xlu1 %v1819_v21, %s1702_s7  ;;  %v554_v33 = vsel %vm1824_vm4, %v1490_v17, %v553_v25  ;;  %v555_v34 = vrot.slane %v553_v25, 4  ;;  %v546_v35 = vrot.slane %v1834_v29, 5  ;;  %v549_v36 = vrot.slane %v294_v30, 5  ;;  %v300_v41 = vld [vmem:[%s1778_s30 + $0x20] sm:$0x1] }
  0x1b   : > { %832 = vrot.lane.b32.xlu0 %v1790_v4, %s1702_s7  ;;  %v328_v37 = vrot.slane %v326_v32, 4  ;;  %v329_v38 = vshll.u32 %v1830_v27, 16  ;;  %v335_v39 = vshll.u32 %v1834_v29, 16  ;;  %v339_v40 = vshrl.u32 %v1834_v29, 16 }
  0x1c   : > { %v557_v42 = vsel %vm1824_vm4, %v555_v34, %v556_v26  ;;  %v547_v43 = vsel %vm1824_vm4, %v1489_v31, %v546_v35  ;;  %v548_v44 = vrot.slane %v546_v35, 4  ;;  %v345_v45 = vshll.u32 %v294_v30, 16  ;;  %v303_v30 = vld [vmem:[%s1778_s30 + $0x2c] sm:$0x1] }
  0x1d   : > { %v1516_v46 = vcombine.low %v554_v33, %v557_v42  ;;  %v331_v47 = vrot.slane %v329_v38, 5  ;;  %v337_v48 = vrot.slane %v335_v39, 5  ;;  %v341_v49 = vrot.slane %v339_v40, 4 }
  0x1e   : > { %v550_v50 = vsel %vm1824_vm4, %v548_v44, %v549_v36  ;;  %v347_v51 = vrot.slane %v345_v45, 5  ;;  %v560_v52 = vrot.slane %v1784_v1, 5  ;;  %v563_v53 = vrot.slane %v300_v41, 5  ;;  %v305_v44 = vld [vmem:[%s1778_s30 + $0x34] sm:$0xf] }
  0x1f   : > { %813 = vrot.lane.b32.xlu0 %v1516_v46, %s1703_s8  ;;  %v1515_v54 = vcombine.low %v547_v43, %v550_v50  ;;  %v332_v55 = vor.u32 %v331_v47, %v328_v37  ;;  %v342_v56 = vor.u32 %v341_v49, %v337_v48  ;;  %v356_v57 = vor.u32 %v355_v24, %v352_v19 }
  0x20   : > { %v561_v59 = vsel %vm1824_vm4, %v1491_v28, %v560_v52  ;;  %v562_v60 = vrot.slane %v560_v52, 4  ;;  %v361_v61 = vrot.slane %v359_v8, 5  ;;  %v369_v62 = vshll.u32 %v297_v22, 16 }
  0x21   : > { %756 = vrot.lane.b32.xlu1 %v1515_v54, %s1704_s9  ;;  %v333_v63 = vrot.slane %v332_v55, 4  ;;  %v343_v2 = vrot.slane %v342_v56, 4  ;;  %v357_v9 = vrot.slane %v356_v57, 4  ;;  %v376_v11 = vrot.slane %v374_v5, 4  ;;  %v306_v54 = vld [vmem:[%s1778_s30 + $0x38] sm:$0x1] }
  0x22   : > { %v564_v13 = vsel %vm1824_vm4, %v562_v60, %v563_v53  ;;  %v366_v17 = vor.u32 %v1812_v18, %v361_v61  ;;  %v371_v19 = vrot.slane %v369_v62, 5  ;;  %v379_v7 = vrot.slane %v377_v6, 5  ;;  %v1918_v60 = vld [vmem:[%s1778_s30 + $0x3c] sm:$0xf] }
  0x23   : > { %v338_v8 = vsel %vm1860_vm5, %v333_v63, %v337_v48  ;;  %v348_v22 = vsel %vm1860_vm5, %v343_v2, %v347_v51  ;;  %v1880_v24 = vcombine.low %v561_v59, %v564_v13  ;;  %v362_v5 = vsel %vm1860_vm5, %v357_v9, %v361_v61 }
  0x24   : > { %v1507_v25 = vcombine.low %v338_v8, %v348_v22  ;;  %v367_v26 = vrot.slane %v366_v17, 4  ;;  %v380_v28 = vor.u32 %v379_v7, %v376_v11  ;;  %v383_v18 = vshll.u32 %v1784_v1, 16  ;;  %v1927_v11 = vld [vmem:[%s1778_s30 + $0x40] sm:$0xf] }
  0x25   : > { %758 = vrot.lane.b32.xlu1 %v1516_v46, %s1704_s9  ;;  %v389_v0 = vrot.slane %v387_v3, 4  ;;  %v393_v6 = vshll.u32 %v300_v41, 16  ;;  %v400_v31 = vrot.slane %v398_v15, 4  ;;  %v403_v32 = vrot.slane %v401_v16, 5  ;;  %v1900_v15 = vld [vmem:[%s1778_s30 + $0x30] sm:$0xf] }
  0x26   : > { %716 = vrot.lane.b32.xlu0 %v1507_v25, %s1705_s10  ;;  %v372_v33 = vsel %vm1860_vm5, %v367_v26, %v371_v19  ;;  %v381_v34 = vrot.slane %v380_v28, 4  ;;  %v385_v35 = vrot.slane %v383_v18, 5  ;;  %v407_v1 = vshll.u32 %v1808_v14, 16 }
  0x27   : > { %v1508_v3 = vcombine.low %v362_v5, %v372_v33  ;;  %v404_v36 = vor.u32 %v403_v32, %v400_v31  ;;  %v413_v37 = vrot.slane %v411_v20, 4  ;;  %v395_v16 = vrot.slane %v393_v6, 5  ;;  %v1939_v6 = vld [vmem:[%s1778_s30 + $0x44] sm:$0x1] }
  0x28   : > { %v390_v38 = vor.u32 %v389_v0, %v385_v35  ;;  %v409_v39 = vrot.slane %v407_v1, 5  ;;  %v417_v40 = vshll.u32 %v303_v30, 16  ;;  %v386_v41 = vsel %vm1860_vm5, %v381_v34, %v385_v35  ;;  %v1948_v1 = vld [vmem:[%s1778_s30 + $0x48] sm:$0xf] }
  0x29   : > { %815 = vrot.lane.b32.xlu1 %v1880_v24, %s1703_s8  ;;  %v405_v42 = vrot.slane %v404_v36, 4  ;;  %v567_v43 = vrot.slane %v1808_v14, 5  ;;  %v422_v47 = vshrl.u32 %v1900_v15, 16  ;;  %v1492_v48 = vrot.slane %v1803_v12, 9 }
  0x2a   : > { %718 = vrot.lane.b32.xlu0 %v1508_v3, %s1705_s10  ;;  %v391_v20 = vrot.slane %v390_v38, 4  ;;  %v414_v45 = vor.u32 %v413_v37, %v409_v39  ;;  %v419_v46 = vrot.slane %v417_v40, 5  ;;  %v570_v49 = vrot.slane %v303_v30, 5 }
  0x2b   : > { %v425_v50 = vshll.u32 %v1900_v15, 16  ;;  %v410_v14 = vsel %vm1860_vm5, %v405_v42, %v409_v39  ;;  %v435_v53 = vshrl.u32 %v305_v44, 16  ;;  %v569_v56 = vrot.slane %v567_v43, 4 }
  0x2c   : > { %v396_v51 = vsel %vm1860_vm5, %v391_v20, %v395_v16  ;;  %v415_v52 = vrot.slane %v414_v45, 4  ;;  %v424_v57 = vrot.slane %v422_v47, 4  ;;  %v431_v61 = vshll.u32 %v305_v44, 16  ;;  %v1956_v16 = vld [vmem:[%s1778_s30 + $0x4c] sm:$0xf] }
  0x2d   : > { %v1509_v55 = vcombine.low %v386_v41, %v396_v51  ;;  %v427_v59 = vrot.slane %v425_v50, 5  ;;  %v437_v62 = vrot.slane %v435_v53, 4  ;;  %v441_v9 = vshll.u32 %v306_v54, 16 }
  0x2e   : > { %794 = vrot.lane.b32.xlu0 %v1508_v3, %s1706_s11  ;;  %v420_v12 = vsel %vm1860_vm5, %v415_v52, %v419_v46  ;;  %v568_v13 = vsel %vm1824_vm4, %v1492_v48, %v567_v43  ;;  %v433_v17 = vrot.slane %v431_v61, 5  ;;  %v574_v19 = vrot.slane %v305_v44, 5 }
  0x2f   : > { %796 = vrot.lane.b32.xlu1 %v1509_v55, %s1706_s11  ;;  %v1924_v63 = vcombine.low %v410_v14, %v420_v12  ;;  %v428_v2 = vor.u32 %v427_v59, %v424_v57  ;;  %v446_v7 = vshrl.u32 %v1918_v60, 16  ;;  %v571_v8 = vsel %vm1824_vm4, %v569_v56, %v570_v49  ;;  %v312_v49 = vld [vmem:[%s1778_s30 + $0x50] sm:$0x1]  ;;  %v1992_v57 = vld [vmem:[%s1778_s30 + $0x54] sm:$0xf] }
  0x30   : > { %v1493_v22 = vrot.slane %v1900_v15, 9  ;;  %v577_v5 = vrot.slane %v306_v54, 5  ;;  %v449_v25 = vshll.u32 %v1918_v60, 16  ;;  %v438_v28 = vor.u32 %v437_v62, %v433_v17 }
  0x31   : > { %v429_v26 = vrot.slane %v428_v2, 4  ;;  %v576_v18 = vrot.slane %v574_v19, 4  ;;  %v459_v0 = vshrl.u32 %v1927_v11, 16  ;;  %v443_v30 = vrot.slane %v441_v9, 5 }
  0x32   : > { %851 = vrot.lane.b32.xlu0 %v1509_v55, %s1707_s12  ;;  %v448_v31 = vrot.slane %v446_v7, 4  ;;  %v451_v32 = vrot.slane %v449_v25, 5  ;;  %v455_v33 = vshll.u32 %v1927_v11, 16  ;;  %v1945_v34 = vcombine.low %v1900_v15, %v305_v44 }
  0x33   : > { %853 = vrot.lane.b32.xlu1 %v1924_v63, %s1707_s12  ;;  %v439_v35 = vrot.slane %v438_v28, 4  ;;  %v575_v3 = vsel %vm1824_vm4, %v1493_v22, %v574_v19  ;;  %v578_v36 = vsel %vm1824_vm4, %v576_v18, %v577_v5  ;;  %v465_v38 = vshll.u32 %v1939_v6, 16  ;;  %v2008_v19 = vld [vmem:[%s1778_s30 + $0x58] sm:$0xf] }
  0x34   : > { %v452_v37 = vor.u32 %v451_v32, %v448_v31  ;;  %v1960_v15 = vcombine.low %v568_v13, %v571_v8  ;;  %v434_v39 = vsel %vm1860_vm5, %v429_v26, %v433_v17  ;;  %v1966_v40 = vcombine.low %v1918_v60, %v1927_v11 }
  0x35   : > { %v461_v41 = vrot.slane %v459_v0, 4  ;;  %v444_v42 = vsel %vm1860_vm5, %v439_v35, %v443_v30  ;;  %v1971_v43 = vrot.slane %v455_v33, 5  ;;  %v581_v44 = vrot.slane %v1927_v11, 5  ;;  %v315_v0 = vld [vmem:[%s1778_s30 + $0x5c] sm:$0x1] }
  0x36   : > { %870 = vrot.lane.b32.xlu0 %v1880_v24, %s1708_s13  ;;  %v470_v20 = vshrl.u32 %v1948_v1, 16  ;;  %v1975_v45 = vcombine.low %v575_v3, %v578_v36  ;;  %v1977_v46 = vrot.slane %v452_v37, 4  ;;  %v473_v47 = vshll.u32 %v1948_v1, 16 }
  0x37   : > { %720 = vrot.lane.b32.xlu1 %v1509_v55, %s1705_s10  ;;  %v483_v48 = vshrl.u32 %v1956_v16, 16  ;;  %v1982_v50 = vrot.slane %v465_v38, 5  ;;  %v1494_v51 = vrot.slane %v1918_v60, 9  ;;  %v584_v14 = vrot.slane %v1939_v6, 5 }
  0x38   : > { %v472_v52 = vrot.slane %v470_v20, 4  ;;  %v1988_v53 = vcombine.low %v434_v39, %v444_v42  ;;  %v475_v54 = vrot.slane %v473_v47, 5  ;;  %v479_v55 = vshll.u32 %v1956_v16, 16  ;;  %v2028_v42 = vld [vmem:[%s1778_s30 + $0x60] sm:$0xf] }
  0x39   : > { %v485_v56 = vrot.slane %v483_v48, 4  ;;  %v462_v59 = vor.u32 %v461_v41, %v1971_v43  ;;  %v1999_v12 = vrot.slane %v581_v44, 4  ;;  %v489_v61 = vshll.u32 %v312_v49, 16 }
  0x3a   : > { %872 = vrot.lane.b32.xlu0 %v1960_v15, %s1708_s13  ;;  %v1495_v62 = vrot.slane %v1948_v1, 9  ;;  %v458_v2 = vsel %vm1860_vm5, %v1977_v46, %v1971_v43  ;;  %v476_v9 = vor.u32 %v475_v54, %v472_v52  ;;  %v481_v13 = vrot.slane %v479_v55, 5  ;;  %v2037_v52 = vld [vmem:[%s1778_s30 + $0x64] sm:$0xf] }
  0x3b   : > { %722 = vrot.lane.b32.xlu1 %v1924_v63, %s1705_s10  ;;  %v588_v17 = vrot.slane %v1956_v16, 5  ;;  %v491_v7 = vrot.slane %v489_v61, 5  ;;  %v591_v8 = vrot.slane %v312_v49, 5  ;;  %v494_v22 = vshrl.u32 %v1992_v57, 16 }
  0x3c   : > { %v497_v5 = vshll.u32 %v1992_v57, 16  ;;  %v477_v25 = vrot.slane %v476_v9, 4  ;;  %v486_v26 = vor.u32 %v485_v56, %v481_v13  ;;  %v463_v30 = vrot.slane %v462_v59, 4 }
  0x3d   : > { %v589_v28 = vsel %vm1824_vm4, %v1495_v62, %v588_v17  ;;  %v590_v18 = vrot.slane %v588_v17, 4  ;;  %v507_v31 = vshrl.u32 %v2008_v19, 16  ;;  %v496_v32 = vrot.slane %v494_v22, 4  ;;  %v318_v17 = vld [vmem:[%s1778_s30 + $0x68] sm:$0x1] }
  0x3e   : > { %760 = vrot.lane.b32.xlu0 %v1880_v24, %s1704_s9  ;;  %v499_v33 = vrot.slane %v497_v5, 5  ;;  %v482_v24 = vsel %vm1860_vm5, %v477_v25, %v481_v13  ;;  %v487_v35 = vrot.slane %v486_v26, 4  ;;  %v503_v36 = vshll.u32 %v2008_v19, 16 }
  0x3f   : > { %762 = vrot.lane.b32.xlu1 %v1960_v15, %s1704_s9  ;;  %v592_v3 = vsel %vm1824_vm4, %v590_v18, %v591_v8  ;;  %v509_v39 = vrot.slane %v507_v31, 4  ;;  %v513_v41 = vshll.u32 %v315_v0, 16  ;;  %v1496_v48 = vrot.slane %v1992_v57, 9 }
  0x40   : > { %v2025_v37 = vcombine.low %v589_v28, %v592_v3  ;;  %v500_v38 = vor.u32 %v499_v33, %v496_v32  ;;  %v492_v20 = vsel %vm1860_vm5, %v487_v35, %v491_v7  ;;  %v505_v47 = vrot.slane %v503_v36, 5  ;;  %v2064_v32 = vld [vmem:[%s1778_s30 + $0x6c] sm:$0xf]  ;;  %v2071_v3 = vld [vmem:[%s1778_s30 + $0x70] sm:$0xf] }
  0x41   : > { %v595_v49 = vrot.slane %v2008_v19, 5  ;;  %v2041_v54 = vcombine.low %v482_v24, %v492_v20  ;;  %v515_v56 = vrot.slane %v513_v41, 5  ;;  %v598_v59 = vrot.slane %v315_v0, 5 }
  0x42   : > { %779 = vrot.lane.b32.xlu0 %v1819_v21, %s1701_s6  ;;  %v501_v55 = vrot.slane %v500_v38, 4  ;;  %v510_v61 = vor.u32 %v509_v39, %v505_v47  ;;  %v601_v13 = vshrl.u32 %v2028_v42, 16  ;;  %v468_v7 = vsel %vm1860_vm5, %v463_v30, %v1982_v50 }
  0x43   : > { %781 = vrot.lane.b32.xlu1 %v1945_v34, %s1701_s6  ;;  %v596_v62 = vsel %vm1824_vm4, %v1496_v48, %v595_v49  ;;  %v597_v9 = vrot.slane %v595_v49, 4  ;;  %v604_v22 = vshll.u32 %v2028_v42, 16  ;;  %v614_v5 = vshrl.u32 %v2037_v52, 16 }
  0x44   : > { %v506_v8 = vsel %vm1860_vm5, %v501_v55, %v505_v47  ;;  %v511_v25 = vrot.slane %v510_v61, 4  ;;  %v603_v28 = vrot.slane %v601_v13, 4  ;;  %v610_v18 = vshll.u32 %v2037_v52, 16  ;;  %v321_v61 = vld [vmem:[%s1778_s30 + $0x74] sm:$0x1] }
  0x45   : > { %v599_v26 = vsel %vm1824_vm4, %v597_v9, %v598_v59  ;;  %v606_v0 = vrot.slane %v604_v22, 5  ;;  %v616_v30 = vrot.slane %v614_v5, 4  ;;  %v620_v31 = vshll.u32 %v318_v17, 16 }
  0x46   : > { %798 = vrot.lane.b32.xlu0 %v1924_v63, %s1706_s11  ;;  %v2061_v50 = vcombine.low %v596_v62, %v599_v26  ;;  %v516_v63 = vsel %vm1860_vm5, %v511_v25, %v515_v56  ;;  %v612_v33 = vrot.slane %v610_v18, 5  ;;  %v1497_v24 = vrot.slane %v2028_v42, 9 }
  0x47   : > { %800 = vrot.lane.b32.xlu1 %v1988_v53, %s1706_s11  ;;  %v629_v35 = vrot.slane %v2037_v52, 5  ;;  %v2073_v36 = vcombine.low %v506_v8, %v516_v63  ;;  %v607_v38 = vor.u32 %v606_v0, %v603_v28  ;;  %v622_v39 = vrot.slane %v620_v31, 5 }
  0x48   : > { %v632_v41 = vrot.slane %v318_v17, 5  ;;  %v617_v20 = vor.u32 %v616_v30, %v612_v33  ;;  %v635_v49 = vshrl.u32 %v2064_v32, 16  ;;  %v2087_v55 = vcombine.low %v458_v2, %v468_v7  ;;  %v1656_v30 = vld [vmem:[%s2429_s1 + $0x20] ss:$0 sps:$4 sm:$0xff]  }
  0x49   : > { %v630_v47 = vsel %vm1824_vm4, %v1497_v24, %v629_v35  ;;  %v631_v48 = vrot.slane %v629_v35, 4  ;;  %v608_v56 = vrot.slane %v607_v38, 4  ;;  %v648_v59 = vshrl.u32 %v2071_v3, 16  ;;  %1595 = vmatprep.subr.msk.bf16.mxu0 %vm1090_vm6, %v1656_v30  ;;  %1596 = vmatprep.subr.msk.bf16.mxu1 %vm1090_vm6, %v1656_v30 }
  0x4a   : > { %817 = vrot.lane.b32.xlu0 %v1960_v15, %s1703_s8  ;;  %v638_v15 = vshll.u32 %v2064_v32, 16  ;;  %v618_v62 = vrot.slane %v617_v20, 4  ;;  %v637_v13 = vrot.slane %v635_v49, 4  ;;  %v644_v17 = vshll.u32 %v2071_v3, 16 }
  0x4b   : > { %819 = vrot.lane.b32.xlu1 %v1975_v45, %s1703_s8  ;;  %v633_v9 = vsel %vm1824_vm4, %v631_v48, %v632_v41  ;;  %v613_v8 = vsel %vm1860_vm5, %v608_v56, %v612_v33  ;;  %v650_v46 = vrot.slane %v648_v59, 4  ;;  %v654_v5 = vshll.u32 %v321_v61, 16 }
  0x4c   : > { %v2097_v22 = vcombine.low %v630_v47, %v633_v9  ;;  %v640_v43 = vrot.slane %v638_v15, 5  ;;  %v623_v2 = vsel %vm1860_vm5, %v618_v62, %v622_v39  ;;  %v646_v7 = vrot.slane %v644_v17, 5  ;;  %v1657_v39 = vld [vmem:[%s2429_s1 + $0x18] sm:$0xff]  }
  0x4d   : > { %v1498_v25 = vrot.slane %v2064_v32, 9  ;;  %v2106_v26 = vcombine.low %v613_v8, %v623_v2  ;;  %v663_v18 = vrot.slane %v2071_v3, 5  ;;  %v666_v0 = vrot.slane %v321_v61, 5 }
  0x4e   : > { %836 = vrot.lane.b32.xlu0 %v1945_v34, %s1702_s7  ;;  %v641_v28 = vor.u32 %v640_v43, %v637_v13  ;;  %v651_v31 = vor.u32 %v650_v46, %v646_v7  ;;  %v656_v63 = vrot.slane %v654_v5, 5  ;;  %v1499_v33 = vcombine.low %v1830_v27, %v1834_v29 }
  0x4f   : > { %838 = vrot.lane.b32.xlu1 %v1966_v40, %s1702_s7  ;;  %v2116_v35 = vsel %vm1824_vm4, %v1498_v25, %v663_v18  ;;  %v665_v38 = vrot.slane %v663_v18, 4  ;;  %v582_v41 = vsel %vm1824_vm4, %v1494_v51, %v581_v44  ;;  %v585_v47 = vsel %vm1824_vm4, %v1999_v12, %v584_v14  ;;  %v1658_v14 = vld [vmem:[%s2429_s1 + $0x10] sm:$0xff]   ;;  %v1660_v12 = vld [vmem:[%s2429_s1] sm:$0xff]  }
  0x50   : > { %v642_v24 = vrot.slane %v641_v28, 4  ;;  %v652_v20 = vrot.slane %v651_v31, 4  ;;  %v1092_v11 = vsel %vm1090_vm6, %v1656_v30, 0  ;;  %v1520_v23 = vcombine.low %v582_v41, %v585_v47 }
  0x51   : > { %v2140_v60 = vsel %vm1824_vm4, %v665_v38, %v666_v0  ;;  %1560 = vmatpush3.bf16.msra.mxu0 %v1092_v11  ;;  %1590 = vmatpush3.bf16.msra.mxu1 %v1092_v11 }
  0x52   : > { %855 = vrot.lane.b32.xlu0 %v1988_v53, %s1707_s12  ;;  %v647_v48 = vsel %vm1860_vm5, %v642_v24, %v646_v7  ;;  %v657_v44 = vsel %vm1860_vm5, %v652_v20, %v656_v63  ;;  %v1528_v51 = vcombine.low %v2116_v35, %v2140_v60  ;;  %1561 = vmatprep.subr.bf16.mxu0 %v1657_v39 }
  0x53   : > { %857 = vrot.lane.b32.xlu1 %v2087_v55, %s1707_s12  ;;  %v1527_v6 = vcombine.low %v647_v48, %v657_v44  ;;  %1586 = vmatprep.subr.bf16.mxu1 %v1657_v39 }
  0x55   : > { %1562 = vmatpush3.bf16.msra.mxu0 %v1657_v39  ;;  %1591 = vmatpush3.bf16.msra.mxu1 %v1657_v39 }
  0x56   : > { %874 = vrot.lane.b32.xlu0 %v1975_v45, %s1708_s13  ;;  %1563 = vmatprep.subr.bf16.mxu0 %v1658_v14 }
  0x57   : > { %724 = vrot.lane.b32.xlu1 %v1988_v53, %s1705_s10  ;;  %1587 = vmatprep.subr.bf16.mxu1 %v1658_v14  ;;  %v2167_v53 = vcombine.low %v1948_v1, %v1956_v16  ;;  %v2182_v1 = vcombine.low %v1992_v57, %v2008_v19  ;;  %v1523_v16 = vcombine.low %v2028_v42, %v2037_v52 }
  0x58   : > { %v1526_v19 = vcombine.low %v2064_v32, %v2071_v3 }
  0x59   : > { %1564 = vmatpush3.bf16.msra.mxu0 %v1658_v14  ;;  %1592 = vmatpush3.bf16.msra.mxu1 %v1658_v14 }
  0x5a   : > { %876 = vrot.lane.b32.xlu0 %v1520_v23, %s1708_s13  ;;  %1565 = vmatprep.subr.bf16.mxu0 %v1659_v58 }
  0x5b   : > { %726 = vrot.lane.b32.xlu1 %v2087_v55, %s1705_s10  ;;  %1588 = vmatprep.subr.bf16.mxu1 %v1659_v58 }
  0x5d   : > { %1566 = vmatpush3.bf16.msra.mxu0 %v1659_v58  ;;  %1593 = vmatpush3.bf16.msra.mxu1 %v1659_v58 }
  0x5e   : > { %764 = vrot.lane.b32.xlu0 %v1975_v45, %s1704_s9  ;;  %1567 = vmatprep.subr.bf16.mxu0 %v1660_v12 }
  0x5f   : > { %766 = vrot.lane.b32.xlu1 %v1520_v23, %s1704_s9  ;;  %1589 = vmatprep.subr.bf16.mxu1 %v1660_v12 }
  0x61   : > { %1568 = vmatpush3.bf16.msra.mxu0 %v1660_v12  ;;  %1594 = vmatpush3.bf16.msra.mxu1 %v1660_v12 }
  0x62   : > { %783 = vrot.lane.b32.xlu0 %v1966_v40, %s1701_s6 }
  0x63   : > { %785 = vrot.lane.b32.xlu1 %v2167_v53, %s1701_s6 }
  0x66   : > { %802 = vrot.lane.b32.xlu0 %v2087_v55, %s1706_s11 }
  0x67   : > { %804 = vrot.lane.b32.xlu1 %v2041_v54, %s1706_s11 }
  0x6a   : > { %821 = vrot.lane.b32.xlu0 %v1520_v23, %s1703_s8 }
  0x6b   : > { %823 = vrot.lane.b32.xlu1 %v2025_v37, %s1703_s8 }
  0x6e   : > { %840 = vrot.lane.b32.xlu0 %v2167_v53, %s1702_s7 }
  0x6f   : > { %842 = vrot.lane.b32.xlu1 %v2182_v1, %s1702_s7 }
  0x72   : > { %859 = vrot.lane.b32.xlu0 %v2041_v54, %s1707_s12 }
  0x73   : > { %861 = vrot.lane.b32.xlu1 %v2073_v36, %s1707_s12 }
  0x76   : > { %878 = vrot.lane.b32.xlu0 %v2025_v37, %s1708_s13 }
  0x77   : > { %728 = vrot.lane.b32.xlu1 %v2041_v54, %s1705_s10 }
  0x7a   : > { %880 = vrot.lane.b32.xlu0 %v2061_v50, %s1708_s13 }
  0x7b   : > { %730 = vrot.lane.b32.xlu1 %v2073_v36, %s1705_s10 }
  0x7e   : > { %768 = vrot.lane.b32.xlu0 %v2025_v37, %s1704_s9 }
  0x7f   : > { %770 = vrot.lane.b32.xlu1 %v2061_v50, %s1704_s9 }
  0x82   : > { %787 = vrot.lane.b32.xlu0 %v2182_v1, %s1701_s6 }
  0x83   : > { %789 = vrot.lane.b32.xlu1 %v1523_v16, %s1701_s6  ;;  %s1480_s6 = sshll.u32 %s1683_s18, 3  ;;  %s2453_s18 = smov (!%p275_p7, %s1683_s18), 1 }
  0x84   : > { %p265_p6 = scmp.lt.s32.totalorder %s1480_s6, 15  ;;  %s278_s17 = sadd.s32 %s1484_s16, %s2453_s18 }
  0x85   : > { %s279_s27 = scalar_lea.vmem %s2432_s4, %s278_s17  ;;  %s286_s30 = scalar_lea.vmem %s2433_s5, %s278_s17 }
  0x86   : > { %806 = vrot.lane.b32.xlu0 %v2073_v36, %s1706_s11  ;;  %s2451_s6 = smov (!%p265_p6, %s1480_s6), 15 }
  0x87   : > { %808 = vrot.lane.b32.xlu1 %v2106_v26, %s1706_s11 }
  0x88   : > { %v778_v45 = vpop.permute.xlu1 %777 }
  0x89   : > { %v776_v57 = vpop.permute.xlu0 %775 }
  0x8a   : > { %825 = vrot.lane.b32.xlu0 %v2061_v50, %s1703_s8 }
  0x8b   : > { %827 = vrot.lane.b32.xlu1 %v2097_v22, %s1703_s8  ;;  %s1482_s8 = sshll.u32 %s2449_s19, 5 }
  0x8c   : > { %v835_v37 = vpop.permute.xlu1 %834 }
  0x8d   : > { %v833_v42 = vpop.permute.xlu0 %832 }
  0x8e   : > { %844 = vrot.lane.b32.xlu0 %v1523_v16, %s1702_s7 }
  0x8f   : > { %846 = vrot.lane.b32.xlu1 %v1526_v19, %s1702_s7  ;;  %s1481_s7 = sshll.u32 %s2451_s6, 1 }
  0x90   : > { %s269_s9 = sadd.s32 %s1482_s8, %s1481_s7 }
  0x91   : > { %v814_v52 = vpop.permute.xlu0 %813  ;;  %s1483_s10 = sshll.u32 %s269_s9, 3 }
  0x92   : > { %863 = vrot.lane.b32.xlu0 %v2106_v26, %s1707_s12  ;;  %s2322_s15 = scalar_lea.vmem %s2431_s3, %s1483_s10 }
  0x93   : > { %865 = vrot.lane.b32.xlu1 %v1527_v6, %s1707_s12  ;;  %v757_v54 = vpop.permute.xlu1 %756 }
  0x96   : > { %882 = vrot.lane.b32.xlu0 %v2097_v22, %s1708_s13 }
  0x97   : > { %884 = vrot.lane.b32.xlu1 %v1528_v51, %s1708_s13  ;;  %v759_v50 = vpop.permute.xlu1 %758 }
  0x98   : > { %v717_v32 = vpop.permute.xlu0 %716 }
  0x99   : > { %v889_v3 = vsel %vm886_vm7, %v1499_v33, %v717_v32 }
  0x9a   : > { %v913_v55 = vsel %vm911_vm8, %v889_v3, %v757_v54 }
  0x9b   : > { %v816_v36 = vpop.permute.xlu1 %815  ;;  %v930_v61 = vsel %vm928_vm9, %v913_v55, %v776_v57 }
  0x9c   : > { %v719_v49 = vpop.permute.xlu0 %718 }
  0x9d   : > { %v892_v56 = vsel %vm886_vm7, %v1800_v10, %v719_v49 }
  0x9e   : > { %v915_v15 = vsel %vm911_vm8, %v892_v56, %v759_v50 }
  0x9f   : > { %v932_v59 = vsel %vm928_vm9, %v915_v15, %v778_v45 }
  0xa0   : > { %v795_v62 = vpop.permute.xlu0 %794 }
  0xa1   : > { %v797_v27 = vpop.permute.xlu1 %796  ;;  %v947_v29 = vsel %vm945_vm10, %v930_v61, %v795_v62 }
  0xa2   : > { %v964_v9 = vsel %vm962_vm11, %v947_v29, %v814_v52  ;;  %v949_v13 = vsel %vm945_vm10, %v932_v59, %v797_v27 }
  0xa3   : > { %v981_v8 = vsel %vm979_vm12, %v964_v9, %v833_v42  ;;  %v966_v22 = vsel %vm962_vm11, %v949_v13, %v816_v36 }
  0xa4   : > { %v852_v17 = vpop.permute.xlu0 %851  ;;  %v983_v2 = vsel %vm979_vm12, %v966_v22, %v835_v37 }
  0xa5   : > { %v854_v10 = vpop.permute.xlu1 %853  ;;  %v998_v43 = vsel %vm996_vm13, %v981_v8, %v852_v17 }
  0xa6   : > { %v1000_v25 = vsel %vm996_vm13, %v983_v2, %v854_v10 }
  0xa8   : > { %v871_v46 = vpop.permute.xlu0 %870 }
  0xa9   : > { %v721_v7 = vpop.permute.xlu1 %720  ;;  %v1015_v5 = vsel %vm1013_vm14, %v998_v43, %v871_v46 }
  0xaa   : > { %1569 = vmatprep.mubr.msk.bf16.mxu0 %vm1073_vm15, %v1015_v5  ;;  %v895_v20 = vsel %vm886_vm7, %v1790_v4, %v721_v7 }
  0xac   : > { %v873_v26 = vpop.permute.xlu0 %872 }
  0xad   : > { %v723_v28 = vpop.permute.xlu1 %722  ;;  %v1017_v18 = vsel %vm1013_vm14, %v1000_v25, %v873_v26 }
  0xae   : > { %1570 = vmatmul.mubr.msk.bf16.vlgmr.msra.gmra.mxu0 %vm1073_vm15, %v1017_v18  ;;  %v898_v51 = vsel %vm886_vm7, %v1819_v21, %v723_v28 }
  0xb0   : > { %v761_v0 = vpop.permute.xlu0 %760 }
  0xb1   : > { %v763_v30 = vpop.permute.xlu1 %762  ;;  %v917_v47 = vsel %vm911_vm8, %v895_v20, %v761_v0 }
  0xb2   : > { %v919_v14 = vsel %vm911_vm8, %v898_v51, %v763_v30 }
  0xb4   : > { %v780_v31 = vpop.permute.xlu0 %779 }
  0xb5   : > { %v782_v63 = vpop.permute.xlu1 %781  ;;  %v934_v48 = vsel %vm928_vm9, %v917_v47, %v780_v31 }
  0xb6   : > { %v936_v58 = vsel %vm928_vm9, %v919_v14, %v782_v63 }
  0xb8   : > { %v799_v33 = vpop.permute.xlu0 %798 }
  0xb9   : > { %v801_v24 = vpop.permute.xlu1 %800  ;;  %v951_v11 = vsel %vm945_vm10, %v934_v48, %v799_v33 }
  0xba   : > { %v953_v16 = vsel %vm945_vm10, %v936_v58, %v801_v24 }
  0xbc   : > { %v818_v35 = vpop.permute.xlu0 %817 }
  0xbd   : > { %v820_v38 = vpop.permute.xlu1 %819  ;;  %v968_v6 = vsel %vm962_vm11, %v951_v11, %v818_v35 }
  0xbe   : > { %v970_v19 = vsel %vm962_vm11, %v953_v16, %v820_v38 }
  0xc0   : > { %v837_v39 = vpop.permute.xlu0 %836 }
  0xc1   : > { %v839_v41 = vpop.permute.xlu1 %838  ;;  %v985_v23 = vsel %vm979_vm12, %v968_v6, %v837_v39 }
  0xc2   : > { %v987_v21 = vsel %vm979_vm12, %v970_v19, %v839_v41 }
  0xc4   : > { %v856_v60 = vpop.permute.xlu0 %855 }
  0xc5   : > { %v858_v44 = vpop.permute.xlu1 %857  ;;  %v1002_v4 = vsel %vm996_vm13, %v985_v23, %v856_v60 }
  0xc6   : > { %v1004_v37 = vsel %vm996_vm13, %v987_v21, %v858_v44 }
  0xc8   : > { %v875_v12 = vpop.permute.xlu0 %874 }
  0xc9   : > { %v725_v45 = vpop.permute.xlu1 %724  ;;  %v1019_v57 = vsel %vm1013_vm14, %v1002_v4, %v875_v12 }
  0xca   : > { %1573 = vmatprep.mubr.msk.bf16.mxu0 %vm1073_vm15, %v1019_v57  ;;  %v901_v62 = vsel %vm886_vm7, %v1945_v34, %v725_v45 }
  0xcc   : > { %v877_v42 = vpop.permute.xlu0 %876 }
  0xcd   : > { %v727_v52 = vpop.permute.xlu1 %726  ;;  %v1021_v54 = vsel %vm1013_vm14, %v1004_v37, %v877_v42 }
  0xce   : > { %1574 = vmatmul.mubr.msk.bf16.gmra.mxu0 %vm1073_vm15, %v1021_v54  ;;  %v904_v10 = vsel %vm886_vm7, %v1966_v40, %v727_v52  ;;  %v2317_v52 = vld [vmem:[%s2430_s2] ss:$0 sm:$0xff] }
  0xd0   : > { %v765_v50 = vpop.permute.xlu0 %764 }
  0xd1   : > { %v767_v32 = vpop.permute.xlu1 %766  ;;  %v921_v27 = vsel %vm911_vm8, %v901_v62, %v765_v50 }
  0xd2   : > { %v923_v22 = vsel %vm911_vm8, %v904_v10, %v767_v32 }
  0xd4   : > { %v784_v3 = vpop.permute.xlu0 %783 }
  0xd5   : > { %v786_v36 = vpop.permute.xlu1 %785  ;;  %v938_v29 = vsel %vm928_vm9, %v921_v27, %v784_v3 }
  0xd6   : > { %v940_v46 = vsel %vm928_vm9, %v923_v22, %v786_v36 }
  0xd8   : > { %v803_v49 = vpop.permute.xlu0 %802 }
  0xd9   : > { %v805_v55 = vpop.permute.xlu1 %804  ;;  %v955_v13 = vsel %vm945_vm10, %v938_v29, %v803_v49 }
  0xda   : > { %v957_v7 = vsel %vm945_vm10, %v940_v46, %v805_v55 }
  0xdc   : > { %v822_v56 = vpop.permute.xlu0 %821 }
  0xdd   : > { %v824_v15 = vpop.permute.xlu1 %823  ;;  %v972_v8 = vsel %vm962_vm11, %v955_v13, %v822_v56 }
  0xde   : > { %v974_v26 = vsel %vm962_vm11, %v957_v7, %v824_v15 }
  0xe0   : > { %v841_v59 = vpop.permute.xlu0 %840 }
  0xe1   : > { %v843_v61 = vpop.permute.xlu1 %842  ;;  %v989_v43 = vsel %vm979_vm12, %v972_v8, %v841_v59 }
  0xe2   : > { %v991_v40 = vsel %vm979_vm12, %v974_v26, %v843_v61 }
  0xe4   : > { %v860_v9 = vpop.permute.xlu0 %859 }
  0xe5   : > { %v862_v17 = vpop.permute.xlu1 %861  ;;  %v1006_v34 = vsel %vm996_vm13, %v989_v43, %v860_v9 }
  0xe6   : > { %v1008_v28 = vsel %vm996_vm13, %v991_v40, %v862_v17 }
  0xe8   : > { %v879_v2 = vpop.permute.xlu0 %878 }
  0xe9   : > { %v729_v5 = vpop.permute.xlu1 %728  ;;  %v1023_v25 = vsel %vm1013_vm14, %v1006_v34, %v879_v2 }
  0xea   : > { %1577 = vmatprep.mubr.msk.bf16.mxu1 %vm1073_vm15, %v1023_v25  ;;  %v907_v48 = vsel %vm886_vm7, %v2167_v53, %v729_v5 }
  0xec   : > { %v881_v18 = vpop.permute.xlu0 %880 }
  0xed   : > { %v731_v0 = vpop.permute.xlu1 %730  ;;  %v1025_v30 = vsel %vm1013_vm14, %v1008_v28, %v881_v18 }
  0xee   : > { %1578 = vmatmul.mubr.msk.bf16.vlgmr.msra.gmra.mxu1 %vm1073_vm15, %v1025_v30  ;;  %v910_v60 = vsel %vm886_vm7, %v2182_v1, %v731_v0 }
  0xf0   : > { %v769_v31 = vpop.permute.xlu0 %768 }
  0xf1   : > { %v771_v63 = vpop.permute.xlu1 %770  ;;  %v925_v11 = vsel %vm911_vm8, %v907_v48, %v769_v31 }
  0xf2   : > { %v927_v44 = vsel %vm911_vm8, %v910_v60, %v771_v63 }
  0xf4   : > { %v788_v33 = vpop.permute.xlu0 %787 }
  0xf5   : > { %v790_v24 = vpop.permute.xlu1 %789  ;;  %v942_v51 = vsel %vm928_vm9, %v925_v11, %v788_v33 }
  0xf6   : > { %v944_v14 = vsel %vm928_vm9, %v927_v44, %v790_v24 }
  0xf8   : > { %v807_v35 = vpop.permute.xlu0 %806 }
  0xf9   : > { %v809_v38 = vpop.permute.xlu1 %808  ;;  %v959_v23 = vsel %vm945_vm10, %v942_v51, %v807_v35 }
  0xfa   : > { %v961_v4 = vsel %vm945_vm10, %v944_v14, %v809_v38 }
  0xfc   : > { %v826_v39 = vpop.permute.xlu0 %825 }
  0xfd   : > { %v828_v41 = vpop.permute.xlu1 %827  ;;  %v976_v53 = vsel %vm962_vm11, %v959_v23, %v826_v39 }
  0xfe   : > { %v978_v1 = vsel %vm962_vm11, %v961_v4, %v828_v41 }
 0x100   : > { %v845_v20 = vpop.permute.xlu0 %844 }
 0x101   : > { %v847_v47 = vpop.permute.xlu1 %846  ;;  %v993_v12 = vsel %vm979_vm12, %v976_v53, %v845_v20 }
 0x102   : > { %v995_v16 = vsel %vm979_vm12, %v978_v1, %v847_v47 }
 0x104   : > { %v864_v6 = vpop.permute.xlu0 %863 }
 0x105   : > { %v866_v58 = vpop.permute.xlu1 %865  ;;  %v1010_v45 = vsel %vm996_vm13, %v993_v12, %v864_v6 }
 0x106   : > { %v1012_v19 = vsel %vm996_vm13, %v995_v16, %v866_v58 }
 0x108   : > { %v883_v57 = vpop.permute.xlu0 %882 }
 0x109   : > { %v885_v21 = vpop.permute.xlu1 %884  ;;  %v1027_v37 = vsel %vm1013_vm14, %v1010_v45, %v883_v57 }
 0x10a   : > { %v1029_v42 = vsel %vm1013_vm14, %v1012_v19, %v885_v21  ;;  %1581 = vmatprep.mubr.msk.bf16.mxu1 %vm1073_vm15, %v1027_v37 }
 0x10b   : > { %1582 = vmatmul.mubr.msk.bf16.gmra.mxu1 %vm1073_vm15, %v1029_v42 }
 0x16e   : > { %v1571_v54 = vpop.f32.mrf.mxu0 }
 0x16f   : > { %v1137_v50 = vadd.f32 %v1571_v54, %v2317_v52 }
 0x170   : > { %v1128_v32 = vpop.f32.mrf.mxu0 }
 0x171   : > { %1193 = vst.msk [vmem:[%s2322_s15 + $0x10] sm:$0xff] %vm945_vm10, %v1137_v50  ;;  %v1129_v3 = vadd.f32 %v2317_v52, %v1128_v32  ;;  %v1248_v59 = vmul.f32 %v1137_v50, %v1137_v50  ;;  %v1210_v9 = vsel %vm945_vm10, %v1137_v50, 0.0 }
 0x172   : > { %v1572_v36 = vpop.f32.mrf.mxu0 }
 0x173   : > { %1191 = vst.msk [vmem:[%s2322_s15] sm:$0xff] %vm945_vm10, %v1129_v3  ;;  %v1140_v49 = vadd.f32 %v1572_v36, %v2317_v52  ;;  %v1246_v56 = vmul.f32 %v1129_v3, %v1129_v3  ;;  %v1207_v61 = vsel %vm945_vm10, %v1129_v3, 0.0  ;;  %v1265_v43 = vsel %vm945_vm10, %v1248_v59, 0.0 }
 0x174   : > { %v1131_v55 = vpop.f32.mrf.mxu0 }
 0x175   : > { %1194 = vst.msk [vmem:[%s2322_s15 + $0x18] sm:$0xff] %vm945_vm10, %v1140_v49  ;;  %v1132_v15 = vadd.f32 %v2317_v52, %v1131_v55  ;;  %v1262_v13 = vsel %vm945_vm10, %v1246_v56, 0.0  ;;  %v1249_v17 = vmul.f32 %v1140_v49, %v1140_v49  ;;  %v1212_v46 = vsel %vm945_vm10, %v1140_v49, 0.0 }
 0x177   : > { %1192 = vst.msk [vmem:[%s2322_s15 + $0x8] sm:$0xff] %vm945_vm10, %v1132_v15  ;;  %v1208_v62 = vsel %vm945_vm10, %v1132_v15, 0.0  ;;  %v1247_v27 = vmul.f32 %v1132_v15, %v1132_v15  ;;  %v1267_v7 = vsel %vm945_vm10, %v1249_v17, 0.0 }
 0x178   : > { %v1209_v29 = vadd.f32 %v1208_v62, %v1207_v61 }
 0x179   : > { %v1263_v10 = vsel %vm945_vm10, %v1247_v27, 0.0 }
 0x17a   : > { %v1211_v8 = vadd.f32 %v1210_v9, %v1209_v29  ;;  %v1264_v22 = vadd.f32 %v1263_v10, %v1262_v13 }
 0x17c   : > { %v1266_v34 = vadd.f32 %v1265_v43, %v1264_v22  ;;  %v1213_v2 = vadd.f32 %v1212_v46, %v1211_v8 }
 0x17e   : > { %v1268_v5 = vadd.f32 %v1267_v7, %v1266_v34 }
 0x18e   : > { %v1575_v25 = vpop.f32.mrf.mxu0 }
 0x18f   : > { %v1153_v26 = vadd.f32 %v1575_v25, %v2317_v52 }
 0x190   : > { %v1144_v40 = vpop.f32.mrf.mxu0 }
 0x191   : > { %1197 = vst.msk [vmem:[%s2322_s15 + $0x30] sm:$0xff] %vm945_vm10, %v1153_v26  ;;  %v1145_v28 = vadd.f32 %v2317_v52, %v1144_v40  ;;  %v1252_v58 = vmul.f32 %v1153_v26, %v1153_v26  ;;  %v1218_v53 = vsel %vm945_vm10, %v1153_v26, 0.0 }
 0x192   : > { %v1576_v18 = vpop.f32.mrf.mxu0 }
 0x193   : > { %1195 = vst.msk [vmem:[%s2322_s15 + $0x20] sm:$0xff] %vm945_vm10, %v1145_v28  ;;  %v1156_v0 = vadd.f32 %v1576_v18, %v2317_v52  ;;  %v1250_v47 = vmul.f32 %v1145_v28, %v1145_v28  ;;  %v1214_v48 = vsel %vm945_vm10, %v1145_v28, 0.0  ;;  %v1273_v12 = vsel %vm945_vm10, %v1252_v58, 0.0 }
 0x194   : > { %v1147_v30 = vpop.f32.mrf.mxu0  ;;  %v1215_v51 = vadd.f32 %v1214_v48, %v1213_v2 }
 0x195   : > { %1198 = vst.msk [vmem:[%s2322_s15 + $0x38] sm:$0xff] %vm945_vm10, %v1156_v0  ;;  %v1148_v31 = vadd.f32 %v2317_v52, %v1147_v30  ;;  %v1269_v11 = vsel %vm945_vm10, %v1250_v47, 0.0  ;;  %v1253_v16 = vmul.f32 %v1156_v0, %v1156_v0  ;;  %v1220_v19 = vsel %vm945_vm10, %v1156_v0, 0.0 }
 0x196   : > { %v1270_v14 = vadd.f32 %v1269_v11, %v1268_v5 }
 0x197   : > { %1196 = vst.msk [vmem:[%s2322_s15 + $0x28] sm:$0xff] %vm945_vm10, %v1148_v31  ;;  %v1251_v60 = vmul.f32 %v1148_v31, %v1148_v31  ;;  %v1216_v44 = vsel %vm945_vm10, %v1148_v31, 0.0  ;;  %v1275_v54 = vsel %vm945_vm10, %v1253_v16, 0.0 }
 0x198   : > { %v1217_v23 = vadd.f32 %v1216_v44, %v1215_v51 }
 0x199   : > { %v1271_v6 = vsel %vm945_vm10, %v1251_v60, 0.0 }
 0x19a   : > { %v1272_v4 = vadd.f32 %v1271_v6, %v1270_v14  ;;  %v1219_v1 = vadd.f32 %v1218_v53, %v1217_v23 }
 0x19c   : > { %v1274_v57 = vadd.f32 %v1273_v12, %v1272_v4  ;;  %v1221_v42 = vadd.f32 %v1220_v19, %v1219_v1 }
 0x19e   : > { %v1276_v36 = vadd.f32 %v1275_v54, %v1274_v57 }
 0x1ae   : > { %v1579_v63 = vpop.f32.mrf.mxu1 }
 0x1af   : > { %v1169_v33 = vadd.f32 %v1579_v63, %v2317_v52 }
 0x1b0   : > { %v1160_v24 = vpop.f32.mrf.mxu1 }
 0x1b1   : > { %1201 = vst.msk [vmem:[%s2322_s15 + $0x50] sm:$0xff] %vm945_vm10, %v1169_v33  ;;  %v1161_v35 = vadd.f32 %v2317_v52, %v1160_v24  ;;  %v1256_v15 = vmul.f32 %v1169_v33, %v1169_v33  ;;  %v1226_v62 = vsel %vm945_vm10, %v1169_v33, 0.0 }
 0x1b2   : > { %v1580_v38 = vpop.f32.mrf.mxu1 }
 0x1b3   : > { %1199 = vst.msk [vmem:[%s2322_s15 + $0x40] sm:$0xff] %vm945_vm10, %v1161_v35  ;;  %v1172_v39 = vadd.f32 %v1580_v38, %v2317_v52  ;;  %v1254_v45 = vmul.f32 %v1161_v35, %v1161_v35  ;;  %v1222_v21 = vsel %vm945_vm10, %v1161_v35, 0.0  ;;  %v1281_v13 = vsel %vm945_vm10, %v1256_v15, 0.0 }
 0x1b4   : > { %v1163_v41 = vpop.f32.mrf.mxu1  ;;  %v1223_v3 = vadd.f32 %v1222_v21, %v1221_v42 }
 0x1b5   : > { %1202 = vst.msk [vmem:[%s2322_s15 + $0x58] sm:$0xff] %vm945_vm10, %v1172_v39  ;;  %v1164_v20 = vadd.f32 %v2317_v52, %v1163_v41  ;;  %v1277_v50 = vsel %vm945_vm10, %v1254_v45, 0.0  ;;  %v1257_v17 = vmul.f32 %v1172_v39, %v1172_v39  ;;  %v1228_v43 = vsel %vm945_vm10, %v1172_v39, 0.0 }
 0x1b6   : > { %v1278_v55 = vadd.f32 %v1277_v50, %v1276_v36 }
 0x1b7   : > { %1200 = vst.msk [vmem:[%s2322_s15 + $0x48] sm:$0xff] %vm945_vm10, %v1164_v20  ;;  %v1255_v37 = vmul.f32 %v1164_v20, %v1164_v20  ;;  %v1224_v32 = vsel %vm945_vm10, %v1164_v20, 0.0  ;;  %v1283_v25 = vsel %vm945_vm10, %v1257_v17, 0.0 }
 0x1b8   : > { %v1225_v56 = vadd.f32 %v1224_v32, %v1223_v3 }
 0x1b9   : > { %v1279_v49 = vsel %vm945_vm10, %v1255_v37, 0.0 }
 0x1ba   : > { %v1280_v59 = vadd.f32 %v1279_v49, %v1278_v55  ;;  %v1227_v29 = vadd.f32 %v1226_v62, %v1225_v56 }
 0x1bc   : > { %v1282_v8 = vadd.f32 %v1281_v13, %v1280_v59  ;;  %v1229_v7 = vadd.f32 %v1228_v43, %v1227_v29 }
 0x1be   : > { %v1284_v18 = vadd.f32 %v1283_v25, %v1282_v8 }
 0x1cb   : > { %v1583_v61 = vpop.f32.mrf.mxu1 }
 0x1cc   : > { %v1185_v27 = vadd.f32 %v1583_v61, %v2317_v52 }
 0x1cd   : > { %v1176_v9 = vpop.f32.mrf.mxu1 }
 0x1ce   : > { %1205 = vst.msk [vmem:[%s2322_s15 + $0x70] sm:$0xff] %vm945_vm10, %v1185_v27  ;;  %v1177_v10 = vadd.f32 %v2317_v52, %v1176_v9  ;;  %v1260_v0 = vmul.f32 %v1185_v27, %v1185_v27  ;;  %v1234_v24 = vsel %vm945_vm10, %v1185_v27, 0.0 }
 0x1cf   : > { %v1584_v22 = vpop.f32.mrf.mxu1 }
 0x1d0   : > { %1203 = vst.msk [vmem:[%s2322_s15 + $0x60] sm:$0xff] %vm945_vm10, %v1177_v10  ;;  %v1230_v46 = vsel %vm945_vm10, %v1177_v10, 0.0  ;;  %v1258_v34 = vmul.f32 %v1177_v10, %v1177_v10  ;;  %v1188_v2 = vadd.f32 %v1584_v22, %v2317_v52  ;;  %v1289_v41 = vsel %vm945_vm10, %v1260_v0, 0.0 }
 0x1d1   : > { %v1179_v5 = vpop.f32.mrf.mxu1  ;;  %v1231_v28 = vadd.f32 %v1230_v46, %v1229_v7 }
 0x1d2   : > { %v1285_v26 = vsel %vm945_vm10, %v1258_v34, 0.0  ;;  %1206 = vst.msk [vmem:[%s2322_s15 + $0x78] sm:$0xff] %vm945_vm10, %v1188_v2  ;;  %v1180_v40 = vadd.f32 %v2317_v52, %v1179_v5  ;;  %v1261_v35 = vmul.f32 %v1188_v2, %v1188_v2  ;;  %v1236_v20 = vsel %vm945_vm10, %v1188_v2, 0.0 }
 0x1d3   : > { %v1286_v63 = vadd.f32 %v1285_v26, %v1284_v18 }
 0x1d4   : > { %1204 = vst.msk [vmem:[%s2322_s15 + $0x68] sm:$0xff] %vm945_vm10, %v1180_v40  ;;  %v1232_v30 = vsel %vm945_vm10, %v1180_v40, 0.0  ;;  %v1259_v31 = vmul.f32 %v1180_v40, %v1180_v40  ;;  %v1291_v60 = vsel %vm945_vm10, %v1261_v35, 0.0 }
 0x1d5   : > { %v1233_v33 = vadd.f32 %v1232_v30, %v1231_v28 }
 0x1d6   : > { %v1287_v38 = vsel %vm945_vm10, %v1259_v31, 0.0 }
 0x1d7   : > { %v1235_v39 = vadd.f32 %v1234_v24, %v1233_v33  ;;  %v1288_v52 = vadd.f32 %v1287_v38, %v1286_v63 }
 0x1d9   : > { %v1237_v47 = vadd.f32 %v1236_v20, %v1235_v39  ;;  %v1290_v48 = vadd.f32 %v1289_v41, %v1288_v52 }
 0x1db   : > { %v1238_v11 = vrot.slane %v1237_v47, 4  ;;  %v1292_v44 = vadd.f32 %v1291_v60, %v1290_v48 }
 0x1dd   : > { %v1239_v51 = vadd.f32 %v1238_v11, %v1237_v47  ;;  %v1293_v6 = vrot.slane %v1292_v44, 4 }
 0x1df   : > { %v1240_v14 = vrot.slane %v1239_v51, 2  ;;  %v1294_v23 = vadd.f32 %v1293_v6, %v1292_v44 }
 0x1e1   : > { %v1241_v58 = vadd.f32 %v1240_v14, %v1239_v51  ;;  %v1295_v4 = vrot.slane %v1294_v23, 2 }
 0x1e3   : > { %v1242_v53 = vrot.slane %v1241_v58, 1  ;;  %v1296_v1 = vadd.f32 %v1295_v4, %v1294_v23 }
 0x1e5   : > { %v1243_v12 = vadd.f32 %v1242_v53, %v1241_v58  ;;  %v1297_v16 = vrot.slane %v1296_v1, 1 }
 0x1e7   : > { %1245 = vst.msk [vmem:[%s279_s27] sm:$0x1] %vm1244_vm0, %v1243_v12  ;;  %v1298_v45 = vadd.f32 %v1297_v16, %v1296_v1 }
 0x1e9   : > { %1299 = vst.msk [vmem:[%s286_s30] sm:$0x1] %vm1244_vm0, %v1298_v45 }
 0x1ea PF: > { %s16_s22 = sadd.s32 1, %s1699_s22   ;;  %s2438_s18 = smov %s1691_s20 }
 0x1eb   : > { %p13_p8 = scmp.ge.s32.totalorder %s16_s22, 6   ;;  %s2439_s19 = smov %s1695_s21 }
 0x1ec   : > { %s2440_s20 = smov %s2443_s23  ;;  %s2441_s21 = smov %s2447_s24 }
 0x1ed   :  { %15 = sbr.rel (!%p13_p8) target bundleno = 3 (0x3), region = 87 }

</bundles_post_ra>
